<compile_context>
chip_gen: v7x
topology: tpu7x:2x2x1
jax: 0.10.0
libtpu: 0.0.40
codegen_flags: <defaults>
</compile_context>

<pallas_src>
import math
import functools

import jax
import jax.numpy as jnp
from jax.experimental import pallas as pl
from jax.experimental.pallas import tpu as pltpu


ACT_DTYPE = jnp.bfloat16  # inter-layer activation dtype


# ----------------------------------------------------------------------------
# small helpers
# ----------------------------------------------------------------------------
def _round_up(x, m):
    return ((x + m - 1) // m) * m


def _pair(v):
    return (v, v) if isinstance(v, int) else tuple(v)


# ----------------------------------------------------------------------------
# Pallas kernels
# ----------------------------------------------------------------------------
def _mm_bn_act_kernel(x_ref, w_ref, s_ref, b_ref, o_ref, acc_ref, *, relu):
    k = pl.program_id(1)

    @pl.when(k == 0)
    def _():
        acc_ref[...] = jnp.zeros_like(acc_ref)

    acc_ref[...] += jnp.dot(x_ref[...], w_ref[...],
                            preferred_element_type=jnp.float32)

    @pl.when(k == pl.num_programs(1) - 1)
    def _():
        acc = acc_ref[...] * s_ref[...] + b_ref[...]
        if relu:
            acc = jnp.maximum(acc, 0.0)
        o_ref[...] = acc.astype(o_ref.dtype)


def matmul_bn_act(x, w, scale, bias, relu, out_dtype=ACT_DTYPE):
    """x: (M, K), w: (K, N), scale/bias: (N,). Returns (M, N) in out_dtype.

    bf16 MXU matmul with fp32 accumulation, K-tiled with a VMEM accumulator,
    lane-dense (128-padded) output columns.
    """
    M, K = x.shape
    N = w.shape[1]
    x = x.astype(jnp.bfloat16)
    w = w.astype(jnp.bfloat16)
    scale = scale.astype(jnp.float32)
    bias = bias.astype(jnp.float32)

    # lane-dense output (pad N to a multiple of 128; padded cols -> 0, sliced off)
    Np = _round_up(N, 128)
    if Np != N:
        w = jnp.pad(w, ((0, 0), (0, Np - N)))
        scale = jnp.pad(scale, (0, Np - N))
        bias = jnp.pad(bias, (0, Np - N))

    # K tiling (padding with zeros contributes nothing to the dot)
    Kp = _round_up(K, 128)
    if Kp != K:
        x = jnp.pad(x, ((0, 0), (0, Kp - K)))
        w = jnp.pad(w, ((0, Kp - K), (0, 0)))
    tk = max(t for t in (512, 384, 256, 128) if Kp % t == 0)
    nk = Kp // tk

    # M tiling: bigger row tiles when K is small (early, mem-bound layers)
    if Kp <= 128:
        tm_target = 1024
    elif Kp <= 256:
        tm_target = 512
    else:
        tm_target = 256
    tm = min(tm_target, _round_up(M, 16))
    Mp = _round_up(M, tm)
    if Mp != M:
        x = jnp.pad(x, ((0, Mp - M), (0, 0)))

    out = pl.pallas_call(
        functools.partial(_mm_bn_act_kernel, relu=relu),
        out_shape=jax.ShapeDtypeStruct((Mp, Np), out_dtype),
        grid=(Mp // tm, nk),
        in_specs=[
            pl.BlockSpec((tm, tk), lambda i, k: (i, k)),
            pl.BlockSpec((tk, Np), lambda i, k: (k, 0)),
            pl.BlockSpec((1, Np), lambda i, k: (0, 0)),
            pl.BlockSpec((1, Np), lambda i, k: (0, 0)),
        ],
        out_specs=pl.BlockSpec((tm, Np), lambda i, k: (i, 0)),
        scratch_shapes=[pltpu.VMEM((tm, Np), jnp.float32)],
        compiler_params=pltpu.CompilerParams(
            dimension_semantics=("parallel", "arbitrary")),
    )(x, w, scale.reshape(1, Np), bias.reshape(1, Np))

    if Mp != M or Np != N:
        out = out[:M, :N]
    return out


def _dw_bn_act_kernel(t_ref, w_ref, s_ref, b_ref, o_ref, *, relu):
    kk = t_ref.shape[0]
    acc = t_ref[0].astype(jnp.float32) * w_ref[0]
    for k in range(1, kk):
        acc = acc + t_ref[k].astype(jnp.float32) * w_ref[k]
    acc = acc * s_ref[...] + b_ref[...]
    if relu:
        acc = jnp.maximum(acc, 0.0)
    o_ref[...] = acc.astype(o_ref.dtype)


def _dw_matmul_call(taps, wd, scale, bias, relu, M, C, out_dtype=ACT_DTYPE):
    kk = taps.shape[0]
    taps = taps.astype(jnp.bfloat16)
    # pick tm so the (kk, tm, C) bf16 input block stays around <= 2 MiB
    budget_rows = (2 * 1024 * 1024) // max(1, kk * C * 2)
    tm_target = max(16, min(1024, (budget_rows // 16) * 16))
    tm = min(tm_target, _round_up(M, 16))
    Mp = _round_up(M, tm)
    if Mp != M:
        taps = jnp.pad(taps, ((0, 0), (0, Mp - M), (0, 0)))
    out = pl.pallas_call(
        functools.partial(_dw_bn_act_kernel, relu=relu),
        out_shape=jax.ShapeDtypeStruct((Mp, C), out_dtype),
        grid=(Mp // tm,),
        in_specs=[
            pl.BlockSpec((kk, tm, C), lambda i: (0, i, 0)),
            pl.BlockSpec((kk, 1, C), lambda i: (0, 0, 0)),
            pl.BlockSpec((1, C), lambda i: (0, 0)),
            pl.BlockSpec((1, C), lambda i: (0, 0)),
        ],
        out_specs=pl.BlockSpec((tm, C), lambda i: (i, 0)),
        compiler_params=pltpu.CompilerParams(dimension_semantics=("parallel",)),
    )(taps, wd.astype(jnp.float32),
      scale.astype(jnp.float32).reshape(1, C),
      bias.astype(jnp.float32).reshape(1, C))
    return out[:M]


def _residual_kernel(a_ref, b_ref, o_ref, *, scale):
    v = a_ref[...].astype(jnp.float32) * scale + b_ref[...].astype(jnp.float32)
    o_ref[...] = jnp.maximum(v, 0.0).astype(o_ref.dtype)


def scale_add_relu(a, b, scale):
    """relu(a*scale + b), a/b: (B,H,W,C).  M-tiled elementwise kernel."""
    B, H, W, C = a.shape
    M = B * H * W
    a2 = a.reshape(M, C).astype(jnp.bfloat16)
    b2 = b.reshape(M, C).astype(jnp.bfloat16)
    tm = min(512, _round_up(M, 16))
    Mp = _round_up(M, tm)
    if Mp != M:
        a2 = jnp.pad(a2, ((0, Mp - M), (0, 0)))
        b2 = jnp.pad(b2, ((0, Mp - M), (0, 0)))
    out = pl.pallas_call(
        functools.partial(_residual_kernel, scale=float(scale)),
        out_shape=jax.ShapeDtypeStruct((Mp, C), ACT_DTYPE),
        grid=(Mp // tm,),
        in_specs=[
            pl.BlockSpec((tm, C), lambda i: (i, 0)),
            pl.BlockSpec((tm, C), lambda i: (i, 0)),
        ],
        out_specs=pl.BlockSpec((tm, C), lambda i: (i, 0)),
        compiler_params=pltpu.CompilerParams(dimension_semantics=("parallel",)),
    )(a2, b2)
    return out[:M].reshape(B, H, W, C)


# ----------------------------------------------------------------------------
# conv wrappers (im2col / tap extraction is glue; MAC + BN + ReLU is in Pallas)
# ----------------------------------------------------------------------------
def _out_size(x, p, k, d, s):
    return (x + 2 * p - d * (k - 1) - 1) // s + 1


def _extract_taps(xp, kh, kw, Ho, Wo, sh, sw, dh, dw):
    taps = []
    for i in range(kh):
        for j in range(kw):
            taps.append(
                xp[:, i * dh: i * dh + (Ho - 1) * sh + 1: sh,
                      j * dw: j * dw + (Wo - 1) * sw + 1: sw, :])
    return taps


def conv2d_bn_act(x, w, scale, bias, stride, padding, dilation, relu,
                  out_dtype=ACT_DTYPE):
    """x: (B,H,W,Cin), w (PyTorch layout): (Cout,Cin,kh,kw)."""
    B, H, W, Cin = x.shape
    Cout, _, kh, kw = w.shape
    sh, sw = stride
    ph, pw = padding
    dh, dw = dilation
    Ho = _out_size(H, ph, kh, dh, sh)
    Wo = _out_size(W, pw, kw, dw, sw)
    xp = jnp.pad(x.astype(jnp.bfloat16), ((0, 0), (ph, ph), (pw, pw), (0, 0)))
    taps = _extract_taps(xp, kh, kw, Ho, Wo, sh, sw, dh, dw)
    patches = jnp.stack(taps, axis=3).reshape(B * Ho * Wo, kh * kw * Cin)
    w2 = jnp.transpose(w, (2, 3, 1, 0)).reshape(kh * kw * Cin, Cout)
    out = matmul_bn_act(patches, w2, scale, bias, relu, out_dtype=out_dtype)
    return out.reshape(B, Ho, Wo, Cout)


def depthwise_bn_act(x, w, scale, bias, stride, padding, dilation, relu):
    """x: (B,H,W,C), w: (C,kh,kw) (depthwise, groups=C)."""
    B, H, W, C = x.shape
    _, kh, kw = w.shape
    sh, sw = stride
    ph, pw = padding
    dh, dw = dilation
    Ho = _out_size(H, ph, kh, dh, sh)
    Wo = _out_size(W, pw, kw, dw, sw)
    xp = jnp.pad(x.astype(jnp.bfloat16), ((0, 0), (ph, ph), (pw, pw), (0, 0)))
    taps = _extract_taps(xp, kh, kw, Ho, Wo, sh, sw, dh, dw)
    t = jnp.stack(taps, axis=0).reshape(kh * kw, B * Ho * Wo, C)
    wd = jnp.transpose(w, (1, 2, 0)).reshape(kh * kw, 1, C)
    out = _dw_matmul_call(t, wd, scale, bias, relu, B * Ho * Wo, C)
    return out.reshape(B, Ho, Wo, C)


# ----------------------------------------------------------------------------
# deterministic parameter construction
# ----------------------------------------------------------------------------
_PARAM_KEY = jax.random.PRNGKey(42)
_param_counter = [0]


def _pkey():
    _param_counter[0] += 1
    return jax.random.fold_in(_PARAM_KEY, _param_counter[0])


def _fold_bn(c):
    gamma = 1.0 + 0.1 * jax.random.normal(_pkey(), (c,), jnp.float32)
    beta = 0.1 * jax.random.normal(_pkey(), (c,), jnp.float32)
    mean = 0.1 * jax.random.normal(_pkey(), (c,), jnp.float32)
    var = 1.0 + 0.1 * jnp.abs(jax.random.normal(_pkey(), (c,), jnp.float32))
    scale = gamma / jnp.sqrt(var + 1e-5)
    bias = beta - mean * scale
    return scale, bias


def make_basic_conv(cin, cout, kernel_size, stride=1, padding=0, dilation=1,
                    relu=True, bn=True, bias=False):
    kh, kw = _pair(kernel_size)
    fan_in = cin * kh * kw
    w = (jax.random.normal(_pkey(), (cout, cin, kh, kw), jnp.float32)
         / math.sqrt(fan_in)).astype(jnp.bfloat16)
    if bn:
        scale, b = _fold_bn(cout)
    elif bias:
        scale = jnp.ones((cout,), jnp.float32)
        b = 0.1 * jax.random.normal(_pkey(), (cout,), jnp.float32)
    else:
        scale = jnp.ones((cout,), jnp.float32)
        b = jnp.zeros((cout,), jnp.float32)
    return dict(kind='conv', w=w, scale=scale, bias=b, stride=_pair(stride),
                padding=_pair(padding), dilation=_pair(dilation), relu=relu)


def make_basic_sep_conv(cin, kernel_size=3, stride=1, padding=0, dilation=1, relu=True):
    kh, kw = _pair(kernel_size)
    w = jax.random.normal(_pkey(), (cin, kh, kw), jnp.float32) / math.sqrt(kh * kw)
    scale, b = _fold_bn(cin)
    return dict(kind='dw', w=w, scale=scale, bias=b, stride=_pair(stride),
                padding=_pair(padding), dilation=_pair(dilation), relu=relu)


def apply_op(op, x, out_dtype=ACT_DTYPE):
    if op['kind'] == 'conv':
        return conv2d_bn_act(x, op['w'], op['scale'], op['bias'],
                             op['stride'], op['padding'], op['dilation'],
                             op['relu'], out_dtype=out_dtype)
    return depthwise_bn_act(x, op['w'], op['scale'], op['bias'],
                            op['stride'], op['padding'], op['dilation'], op['relu'])


def apply_seq(ops, x):
    for op in ops:
        x = apply_op(op, x)
    return x


def apply_fused_head(loc_op, conf_op, src):
    """Fuse loc + conf 3x3 convs (same input/geometry) into one lane-dense matmul."""
    w = jnp.concatenate([loc_op['w'], conf_op['w']], axis=0)
    scale = jnp.concatenate([loc_op['scale'], conf_op['scale']], axis=0)
    bias = jnp.concatenate([loc_op['bias'], conf_op['bias']], axis=0)
    out = conv2d_bn_act(src, w, scale, bias, loc_op['stride'], loc_op['padding'],
                        loc_op['dilation'], relu=False, out_dtype=jnp.float32)
    cl = loc_op['w'].shape[0]
    return out[..., :cl], out[..., cl:]


# ----------------------------------------------------------------------------
# RFB blocks
# ----------------------------------------------------------------------------
def make_rfb_a(in_planes, out_planes, stride=1, scale=1.0):
    inter = in_planes // 4
    branch0 = [make_basic_conv(in_planes, inter, 1),
               make_basic_sep_conv(inter, 3, stride=1, padding=1, dilation=1, relu=False)]
    branch1 = [make_basic_conv(in_planes, inter, 1),
               make_basic_conv(inter, inter, (3, 1), stride=1, padding=(1, 0)),
               make_basic_sep_conv(inter, 3, stride=1, padding=3, dilation=3, relu=False)]
    branch2 = [make_basic_conv(in_planes, inter, 1),
               make_basic_conv(inter, inter, (1, 3), stride=stride, padding=(0, 1)),
               make_basic_sep_conv(inter, 3, stride=1, padding=3, dilation=3, relu=False)]
    branch3 = [make_basic_conv(in_planes, inter // 2, 1),
               make_basic_conv(inter // 2, (inter // 4) * 3, (1, 3), stride=1, padding=(0, 1)),
               make_basic_conv((inter // 4) * 3, inter, (3, 1), stride=stride, padding=(1, 0)),
               make_basic_sep_conv(inter, 3, stride=1, padding=5, dilation=5, relu=False)]
    conv_linear = make_basic_conv(4 * inter, out_planes, 1, relu=False)
    return dict(kind='rfb_a', branches=[branch0, branch1, branch2, branch3],
                conv_linear=conv_linear, scale=scale)


def apply_rfb_a(m, x):
    outs = [apply_seq(b, x) for b in m['branches']]
    out = jnp.concatenate(outs, axis=-1)
    out = apply_op(m['conv_linear'], out)
    return scale_add_relu(out, x, m['scale'])


def make_rfb(in_planes, out_planes, stride=1, scale=1.0):
    # BasicRFB block of the original RFB_Net_mobile.py (used as extras[0]).
    inter = in_planes // 8
    branch0 = [make_basic_conv(in_planes, inter, 1),
               make_basic_conv(inter, (inter // 2) * 3, (1, 3), stride=1, padding=(0, 1)),
               make_basic_conv((inter // 2) * 3, (inter // 2) * 3, (3, 1), stride=stride, padding=(1, 0)),
               make_basic_sep_conv((inter // 2) * 3, 3, stride=1, padding=3, dilation=3, relu=False)]
    branch1 = [make_basic_conv(in_planes, inter, 1),
               make_basic_conv(inter, (inter // 2) * 3, 3, stride=1, padding=1),
               make_basic_conv((inter // 2) * 3, (inter // 2) * 3, 3, stride=stride, padding=1),
               make_basic_sep_conv((inter // 2) * 3, 3, stride=1, padding=5, dilation=5, relu=False)]
    conv_linear = make_basic_conv(3 * inter, out_planes, 1, relu=False)
    shortcut = make_basic_conv(in_planes, out_planes, 1, stride=stride, relu=False)
    return dict(kind='rfb', branches=[branch0, branch1], conv_linear=conv_linear,
                shortcut=shortcut, scale=scale)


def apply_rfb(m, x):
    outs = [apply_seq(b, x) for b in m['branches']]
    out = jnp.concatenate(outs, axis=-1)
    out = apply_op(m['conv_linear'], out)
    short = apply_op(m['shortcut'], x)
    return scale_add_relu(out, short, m['scale'])


# ----------------------------------------------------------------------------
# network construction (MobileNet base + extras + multibox heads)
# ----------------------------------------------------------------------------
def make_mobilenet_base():
    layers = [[make_basic_conv(3, 32, 3, stride=2, padding=1)]]     # conv_bn(3, 32, 2)
    dw_cfg = [(32, 64, 1), (64, 128, 2), (128, 128, 1), (128, 256, 2), (256, 256, 1),
              (256, 512, 2), (512, 512, 1), (512, 512, 1), (512, 512, 1), (512, 512, 1),
              (512, 512, 1), (512, 1024, 2), (1024, 1024, 1)]
    for cin, cout, s in dw_cfg:                                     # conv_dw(cin, cout, s)
        layers.append([make_basic_sep_conv(cin, 3, stride=s, padding=1),
                       make_basic_conv(cin, cout, 1)])
    return layers


def make_extras():
    # extras = {'300': ['S', 512]}  ->  BasicRFB(1024, 512, stride=2) + BasicConv tail
    return [make_rfb(1024, 512, stride=2, scale=1.0),
            make_basic_conv(512, 128, 1),
            make_basic_conv(128, 256, 3, stride=2, padding=1),
            make_basic_conv(256, 128, 1),
            make_basic_conv(128, 256, 3, stride=2, padding=1),
            make_basic_conv(256, 64, 1),
            make_basic_conv(64, 128, 3, stride=2, padding=1)]


def make_head(num_classes):
    src_channels = [512, 1024, 512, 256, 256, 128]
    mbox = [6, 6, 6, 6, 4, 4]
    loc = [make_basic_conv(c, m * 4, 3, padding=1, relu=False, bn=False, bias=True)
           for c, m in zip(src_channels, mbox)]
    conf = [make_basic_conv(c, m * num_classes, 3, padding=1, relu=False, bn=False, bias=True)
            for c, m in zip(src_channels, mbox)]
    return loc, conf


class RFBNetPallas:
    def __init__(self, phase='train', size=300, num_classes=21):
        self.phase = phase
        self.num_classes = num_classes
        self.size = size
        self.indicator = 1
        self.base = make_mobilenet_base()
        self.norm = make_rfb_a(512, 512, stride=1, scale=1.0)
        self.extras = make_extras()
        self.loc, self.conf = make_head(num_classes)

    def __call__(self, x_nchw):
        # PyTorch NCHW input -> NHWC internal layout, bf16 activations.
        x = jnp.transpose(x_nchw, (0, 2, 3, 1)).astype(ACT_DTYPE)
        sources, loc, conf = [], [], []

        for k in range(12):
            x = apply_seq(self.base[k], x)
        s = apply_rfb_a(self.norm, x)
        sources.append(s)

        for k in range(12, len(self.base)):
            x = apply_seq(self.base[k], x)
        sources.append(x)

        for k, v in enumerate(self.extras):
            x = apply_rfb(v, x) if (isinstance(v, dict) and v.get('kind') == 'rfb') else apply_op(v, x)
            if k < self.indicator or k % 2 == 0:
                sources.append(x)

        for src, l, c in zip(sources, self.loc, self.conf):
            # head outputs are already NHWC, matching .permute(0,2,3,1).contiguous()
            lo, co = apply_fused_head(l, c, src)
            loc.append(lo.reshape(src.shape[0], -1))
            conf.append(co.reshape(src.shape[0], -1))

        loc = jnp.concatenate(loc, axis=1)
        conf = jnp.concatenate(conf, axis=1)
        if self.phase == 'test':
            output = (loc.reshape(loc.shape[0], -1, 4),
                      jax.nn.softmax(conf.reshape(-1, self.num_classes), axis=-1))
        else:
            output = (loc.reshape(loc.shape[0], -1, 4),
                      conf.reshape(conf.shape[0], -1, self.num_classes))
        return output


if __name__ == "__main__":
    # small input consistent with the module: NCHW, 3 channels (64x64 instead of 300x300)
    key = jax.random.PRNGKey(0)
    x = jax.random.normal(key, (2, 3, 64, 64), jnp.float32)

    net = RFBNetPallas(phase='train', size=300, num_classes=21)
    loc, conf = net(x)
    loc, conf = jax.block_until_ready((loc, conf))

    # 64x64 input -> feature maps 4x4, 2x2, 1x1, 1x1, 1x1, 1x1 with mbox [6,6,6,6,4,4]
    # => 140 priors per image.
    assert loc.shape == (2, 140, 4), loc.shape
    assert conf.shape == (2, 140, 21), conf.shape
    assert jnp.all(jnp.isfinite(loc)) and jnp.all(jnp.isfinite(conf))
    print("KERNEL_OK")
</pallas_src>

<mosaic_0001>
module attributes {stable_mosaic.version = 11 : i64} {
  func.func @_mm_bn_act_kernel(%arg0: i32, %arg1: i32, %arg2: memref<1024x128xbf16, #tpu.memory_space<vmem>>, %arg3: memref<128x128xbf16, #tpu.memory_space<vmem>>, %arg4: memref<1x128xf32, #tpu.memory_space<vmem>>, %arg5: memref<1x128xf32, #tpu.memory_space<vmem>>, %arg6: memref<1024x128xbf16, #tpu.memory_space<vmem>>, %arg7: memref<1024x128xf32, #tpu.memory_space<vmem>>) attributes {dimension_semantics = [#tpu.dimension_semantics<parallel>, #tpu.dimension_semantics<arbitrary>], iteration_bounds = array<i64: 2, 1>, scalar_prefetch = 0 : i64, scratch_operands = 1 : i64, tpu.core_type = #tpu.core_type<tc>, window_params = [{transform_indices = @transform_0, window_bounds = array<i64: 1024, 128>}, {transform_indices = @transform_1, window_bounds = array<i64: 128, 128>}, {pipeline_mode = #tpu.pipeline_mode<synchronous>, transform_indices = @transform_2, window_bounds = array<i64: 1, 128>}, {pipeline_mode = #tpu.pipeline_mode<synchronous>, transform_indices = @transform_3, window_bounds = array<i64: 1, 128>}, {transform_indices = @transform_4, window_bounds = array<i64: 1024, 128>}]} {
    %c0_i32 = arith.constant 0 : i32
    %0 = arith.cmpi eq, %arg1, %c0_i32 : i32
    %1 = arith.extui %0 : i1 to i32
    %c0_i32_0 = arith.constant 0 : i32
    %2 = arith.cmpi ne, %1, %c0_i32_0 : i32
    scf.if %2 {
      %cst_10 = arith.constant 0.000000e+00 : f32
      %12 = vector.broadcast %cst_10 : f32 to vector<1024x128xf32>
      %c0_11 = arith.constant 0 : index
      %c0_12 = arith.constant 0 : index
      %13 = vector.load %arg7[%c0_11, %c0_12] : memref<1024x128xf32, #tpu.memory_space<vmem>>, vector<1024x128xf32>
      tpu.vector_store %arg7[%c0_11, %c0_12], %12 {strides = array<i32>} : memref<1024x128xf32, #tpu.memory_space<vmem>>, vector<1024x128xf32>,
    } else {
    }
    %c0 = arith.constant 0 : index
    %c0_1 = arith.constant 0 : index
    %3 = vector.load %arg7[%c0, %c0_1] : memref<1024x128xf32, #tpu.memory_space<vmem>>, vector<1024x128xf32>
    %c0_2 = arith.constant 0 : index
    %c0_3 = arith.constant 0 : index
    %4 = vector.load %arg2[%c0_2, %c0_3] : memref<1024x128xbf16, #tpu.memory_space<vmem>>, vector<1024x128xbf16>
    %c0_4 = arith.constant 0 : index
    %c0_5 = arith.constant 0 : index
    %5 = vector.load %arg3[%c0_4, %c0_5] : memref<128x128xbf16, #tpu.memory_space<vmem>>, vector<128x128xbf16>
    %cst = arith.constant dense<0.000000e+00> : vector<1024x128xf32>
    %6 = tpu.matmul %4, %5, %cst {dimension_numbers = #tpu.dot_dimension_numbers<[1], [0], [0], [1], [0, 0, 1, 1], [], []>} : vector<1024x128xbf16>, vector<128x128xbf16>, vector<1024x128xf32> -> vector<1024x128xf32>
    %7 = arith.addf %3, %6 : vector<1024x128xf32>
    %c0_6 = arith.constant 0 : index
    %c0_7 = arith.constant 0 : index
    %8 = vector.load %arg7[%c0_6, %c0_7] : memref<1024x128xf32, #tpu.memory_space<vmem>>, vector<1024x128xf32>
    tpu.vector_store %arg7[%c0_6, %c0_7], %7 {strides = array<i32>} : memref<1024x128xf32, #tpu.memory_space<vmem>>, vector<1024x128xf32>,
    %c0_i32_8 = arith.constant 0 : i32
    %9 = arith.cmpi eq, %arg1, %c0_i32_8 : i32
    %10 = arith.extui %9 : i1 to i32
    %c0_i32_9 = arith.constant 0 : i32
    %11 = arith.cmpi ne, %10, %c0_i32_9 : i32
    scf.if %11 {
      %c0_10 = arith.constant 0 : index
      %c0_11 = arith.constant 0 : index
      %12 = vector.load %arg7[%c0_10, %c0_11] : memref<1024x128xf32, #tpu.memory_space<vmem>>, vector<1024x128xf32>
      %c0_12 = arith.constant 0 : index
      %c0_13 = arith.constant 0 : index
      %13 = vector.load %arg4[%c0_12, %c0_13] : memref<1x128xf32, #tpu.memory_space<vmem>>, vector<1x128xf32>
      %14 = vector.broadcast %13 : vector<1x128xf32> to vector<1024x128xf32>
      %15 = arith.mulf %12, %14 : vector<1024x128xf32>
      %c0_14 = arith.constant 0 : index
      %c0_15 = arith.constant 0 : index
      %16 = vector.load %arg5[%c0_14, %c0_15] : memref<1x128xf32, #tpu.memory_space<vmem>>, vector<1x128xf32>
      %17 = vector.broadcast %16 : vector<1x128xf32> to vector<1024x128xf32>
      %18 = arith.addf %15, %17 : vector<1024x128xf32>
      %cst_16 = arith.constant 0.000000e+00 : f32
      %19 = vector.broadcast %cst_16 : f32 to vector<1024x128xf32>
      %20 = arith.maximumf %18, %19 : vector<1024x128xf32>
      %21 = arith.truncf %20 : vector<1024x128xf32> to vector<1024x128xbf16>
      %c0_17 = arith.constant 0 : index
      %c0_18 = arith.constant 0 : index
      %22 = vector.load %arg6[%c0_17, %c0_18] : memref<1024x128xbf16, #tpu.memory_space<vmem>>, vector<1024x128xbf16>
      tpu.vector_store %arg6[%c0_17, %c0_18], %21 {strides = array<i32>} : memref<1024x128xbf16, #tpu.memory_space<vmem>>, vector<1024x128xbf16>,
    } else {
    }
    return
  }
  func.func @transform_0(%arg0: i32, %arg1: i32) -> (i32, i32) {
    %c0_i32 = arith.constant 0 : i32
    return %arg0, %arg1 : i32, i32
  }
  func.func @transform_1(%arg0: i32, %arg1: i32) -> (i32, i32) {
    %c0_i32 = arith.constant 0 : i32
    %c0_i32_0 = arith.constant 0 : i32
    return %arg1, %c0_i32 : i32, i32
  }
  func.func @transform_2(%arg0: i32, %arg1: i32) -> (i32, i32) {
    %c0_i32 = arith.constant 0 : i32
    %c0_i32_0 = arith.constant 0 : i32
    %c0_i32_1 = arith.constant 0 : i32
    return %c0_i32, %c0_i32_0 : i32, i32
  }
  func.func @transform_3(%arg0: i32, %arg1: i32) -> (i32, i32) {
    %c0_i32 = arith.constant 0 : i32
    %c0_i32_0 = arith.constant 0 : i32
    %c0_i32_1 = arith.constant 0 : i32
    return %c0_i32, %c0_i32_0 : i32, i32
  }
  func.func @transform_4(%arg0: i32, %arg1: i32) -> (i32, i32) {
    %c0_i32 = arith.constant 0 : i32
    %c0_i32_0 = arith.constant 0 : i32
    return %arg0, %c0_i32 : i32, i32
  }
}

</mosaic_0001>

<bundles_post_ra>
// kernel: tpu_custom_call.1
= control target key start
LH: loop header
LB: loop body
LE: loop exit
PB: predicated region body
PF: predicated region fallthrough
CT: control target
= control target key end

     0   :  { %9 = vsyncpa [#allocation4], 0  ;;  %s5104_s0 = inlined_call_operand.hbm [shape: bf16[2048,128], index: 0, kind: input, shape index: {}]   ;;  %s5105_s1 = inlined_call_operand.hbm [shape: bf16[128,128], index: 1, kind: input, shape index: {}]   ;;  %s5106_s2 = inlined_call_operand.vmem [shape: f32[1,128], index: 2, kind: input, shape index: {}]   ;;  %s5107_s3 = inlined_call_operand.vmem [shape: f32[1,128], index: 3, kind: input, shape index: {}]   ;;  %s5108_s4 = inlined_call_operand.hbm [shape: bf16[2048,128], index: 4, kind: output, shape index: {}]  }
   0x1   :  { %11 = vsyncpa [#allocation4 + $0x1], 0 }
   0x2   :  { %12 = vsyncpa [#allocation7], 0 }
   0x3   :  { %13 = vsyncpa [#allocation5], 0 }
   0x4   :  { %15 = vsyncpa [#allocation5 + $0x1], 0  ;;  %s4466_s15 = smov 0   ;;  %s4468_s16 = smov 0  }
   0x5   :  { %s4470_s17 = smov 0   ;;  %s4472_s18 = smov 0  }
   0x6   :  { %s4474_s19 = smov 0   ;;  %s4476_s20 = smov 0  }
   0x7 LB: > { %s3173_s21 = sadd.s32 4294967295, %s4432_s20   ;;  %s3174_s22 = sadd.s32 4294967294, %s4432_s20   ;;  %s4432_s20 = sphi %s4476_s20, %s21_s20   ;;  %s4428_s19 = sphi %s4474_s19, %s5132_s19   ;;  %s4424_s18 = sphi %s4472_s18, %s5131_s18   ;;  %s4420_s17 = sphi %s4470_s17, %s5130_s17   ;;  %s4416_s16 = sphi %s4468_s16, %s5129_s16   ;;  %s4412_s15 = sphi %s4466_s15, %s5128_s15  }
   0x8   : > { %p55_p0 = scmp.ne.s32.totalorder %s4416_s16, %s4412_s15  ;;  %p4500_p1 = scmp.eq.s32.totalorder %s3173_s21, 0 }
   0x9   : > { %p4504_p2 = scmp.eq.s32.totalorder %s3173_s21, 1  ;;  %p153_p3 = scmp.eq.s32.totalorder %s3174_s22, 1 }
   0xa   : > { %s5113_s23 = scalar_select %p4500_p1, 1, 0 }
   0xb   : > { %s5114_s24 = scalar_select %p4504_p2, 1, 0 }
   0xc   : > { %p4510_p4 = por %p4500_p1, %p55_p0  ;;  %p3175_p5 = scmp.ge.s32.totalorder %s4432_s20, 1 }
   0xd   : > { %p4515_p6 = por %p153_p3, %p55_p0  ;;  %p160_p7 = scmp.lt.s32.totalorder %s4432_s20, 3 }
   0xe   : > { %s5115_s25 = scalar_select %p4510_p4, 1, 0 }
   0xf   : > { %s5116_s26 = scalar_select %p4515_p6, 1, 0 }
  0x10   : > { %p4520_p8 = pnand %p3175_p5, %p160_p7  ;;  %s4434_s28 = smov [#allocation6]  }
  0x11   : > { %s175_s29 = sshll.u32 %s4434_s28, 4  ;;  %s33_s5 = sadd.s32 1, %s4428_s19  ;;  %s176_s29 = int_to_ptr.vmem [resolvable:$true] %s175_s29 }
  0x12   : > { %s5117_s27 = scalar_select %p4520_p8, 1, 0 }
  0x13   : > { %p4145_p9 = pneg %p4520_p8  ;;  %s4288_s8 = scalar_lea.hbm %s5105_s1, 1024 }
  0x14   : > { %p4289_p12 = scmp.ne.s32.totalorder %s5105_s1, %s4288_s8  ;;  %p4295_p5 = scmp.lt.u32.totalorder %s4288_s8, %s5105_s1 }
  0x15   : > { %p4529_p11 = pnand %p4145_p9, %p4500_p1 }
  0x17   : > { %p4290_p13 = pneg %p4529_p11 }
  0x19   : > { %p4291_p0 = pnand %p4290_p13, %p4289_p12 }
  0x1b   : > { %p4292_p3 = pneg %p4291_p0 }
  0x1d   : > { %p4297_p7 = pnand %p4295_p5, %p4292_p3 }
  0x1f   : > { %4300 = shalt.err (!%p4297_p7)
}
  0x20   : > { %s4301_s13 = scalar_lea.vmem %s176_s29, 1024  ;;  %p4309_p1 = scmp.lt.s32.totalorder %s176_s29, %s176_s29 }
  0x21   : > { %p4302_p9 = scmp.ne.s32.totalorder %s176_s29, %s4301_s13  ;;  %p4310_p4 = scmp.lt.s32.totalorder %s4301_s13, %s4301_s13 }
  0x23   : > { %p4304_p10 = pnand %p4302_p9, %p4290_p13  ;;  %p4311_p8 = por %p4310_p4, %p4309_p1 }
  0x25   : > { %p4305_p6 = pneg %p4304_p10 }
  0x27   : > { %p4312_p2 = pnand %p4311_p8, %p4305_p6 }
  0x29   : > { %4315 = shalt.err (!%p4312_p2)
}
  0x2a   : > { %s4435_s14 = smov 64   ;;  %s4436_s21 = smov 4  }
  0x2b   : > { %4148 = dma.hbm_to_vmem [thread:$0]  (!%p4529_p11), %s5105_s1, 1024, %s176_s29, [#allocation7], %s4435_s14, %s4435_s14, %s4436_s21  }
  0x2c   : > { %p35_p1 = scmp.ge.s32.totalorder %s33_s5, 2  ;;  %s42_s6 = sadd.s32 1, %s4420_s17 }
  0x2d   : > { %p49_p2 = scmp.ne.s32.totalorder %s4420_s17, %s4416_s16  ;;  %p50_p4 = scmp.eq.s32.totalorder %s4432_s20, 0 }
  0x2e   : > { %s5134_s5 = smov (%p35_p1, %s33_s5), 0  ;;  %p5120_p8 = scmp.ne.s32.totalorder %s5114_s24, 0 }
  0x2f   : > { %p4559_p6 = por %p50_p4, %p49_p2  ;;  %s37_s8 = ssub.s32 %s4428_s19, %s5134_s5 }
  0x30   : > { %p4565_p10 = por %p5120_p8, %p49_p2  ;;  %p4158_p12 = scmp.lt.s32.totalorder %s4432_s20, 2 }
  0x31   : > { %p40_p11 = scmp.eq.s32.totalorder %s37_s8, 0  ;;  %s195_s29 = sand.u32 1, %s4420_s17  }
  0x32   : > { %s3178_s9 = sshll.u32 %s195_s29, 9  ;;  %s3392_s11 = sshll.u32 %s4428_s19, 13 }
  0x33   : > { %s4574_s10 = scalar_select %p40_p11, %s4420_s17, %s42_s6  }
  0x34   : > { %s4580_s22 = scalar_lea.hbm %s5104_s0, %s3392_s11  ;;  %s199_s24 = scalar_lea.vmem [#allocation3], %s3178_s9 }
  0x35   : > { %s207_s28 = sshll.u32 %s199_s24, 4  ;;  %p4586_p13 = pnand %p4158_p12, %p4559_p6  ;;  %s4582_s28 = int_to_ptr.vmem [resolvable:$true] %s207_s28 }
  0x36   : > { %s4590_s6 = scalar_lea.sflag [#allocation4], %s195_s29  ;;  %s4316_s12 = scalar_lea.hbm %s4580_s22, 8192 }
  0x37   : > { %p4317_p0 = scmp.ne.s32.totalorder %s4580_s22, %s4316_s12  ;;  %p4318_p3 = pneg %p4586_p13 }
  0x38   : > { %s4321_s7 = scalar_lea.hbm %s5104_s0, 16384  ;;  %p4322_p9 = scmp.lt.u32.totalorder %s4580_s22, %s5104_s0 }
  0x39   : > { %p4319_p5 = pnand %p4318_p3, %p4317_p0  ;;  %p4323_p1 = scmp.lt.u32.totalorder %s4321_s7, %s4316_s12 }
  0x3a   : > { %p4325_p4 = scmp.lt.u32.totalorder %s4316_s12, %s4580_s22 }
  0x3b   : > { %p4320_p7 = pneg %p4319_p5  ;;  %p4324_p2 = por %p4323_p1, %p4322_p9 }
  0x3d   : > { %p4326_p6 = por %p4325_p4, %p4324_p2 }
  0x3f   : > { %p4327_p8 = pnand %p4326_p6, %p4320_p7 }
  0x41   : > { %4330 = shalt.err (!%p4327_p8)
}
  0x42   : > { %s4331_s29 = scalar_lea.vmem %s4582_s28, 8192  ;;  %s4437_s9 = smov [#allocation3]  }
  0x43   : > { %p4332_p12 = scmp.ne.s32.totalorder %s4582_s28, %s4331_s29  ;;  %s4336_s11 = sshll.u32 %s4437_s9, 4  ;;  %s4337_s11 = int_to_ptr.vmem [resolvable:$false] %s4336_s11 }
  0x44   : > { %s4338_s13 = scalar_lea.vmem %s4337_s11, 16384  ;;  %p4339_p5 = scmp.lt.s32.totalorder %s4582_s28, %s4337_s11 }
  0x45   : > { %p4334_p11 = pnand %p4332_p12, %p4318_p3  ;;  %p4340_p9 = scmp.lt.s32.totalorder %s4338_s13, %s4331_s29 }
  0x47   : > { %p4335_p0 = pneg %p4334_p11  ;;  %p4341_p1 = por %p4340_p9, %p4339_p5 }
  0x49   : > { %p4342_p2 = pnand %p4341_p1, %p4335_p0 }
  0x4b   : > { %4345 = shalt.err (!%p4342_p2)
}
  0x4c   : > { %4152 = dma.hbm_to_vmem [thread:$0]  (!%p4586_p13), %s4580_s22, 8192, %s4582_s28, %s4590_s6, %s4435_s14, %s4435_s14, %s4436_s21  }
  0x4d   : > { %p5123_p3 = scmp.ne.s32.totalorder %s5117_s27, 0 }
  0x4e   : > { %s4624_s12 = sand.u32 (!%p5123_p3), 1, %s4416_s16   ;;  %p5124_p7 = scmp.ne.s32.totalorder (!%p5123_p3), %s5115_s25, 0 }
  0x4f   : > { %219 = sbr.rel (%p5123_p3) target bundleno = 482 (0x1e2), region = 36  ;;  %s3182_s7 = sshll.u32 (!%p5123_p3), %s4624_s12, 9 }
  0x50   : > { %s222_s24 = scalar_lea.sflag (!%p5123_p3), [#allocation4], %s4624_s12  ;;  %s4630_s8 = scalar_lea.vmem (!%p5123_p3), [#allocation3], %s3182_s7 }
  0x56   : > { %4399 = dma.done.wait (%p5124_p7), %s222_s24, 8192  }
  0x57   : > { %4401 = vsyncadd (%p5124_p7), %s222_s24, 4294959104  ;;  %p5125_p13 = scmp.ne.s32.totalorder %s5113_s23, 0 }
  0x59   : > { %4403 = dma.done.wait (%p5125_p13), [#allocation7], 1024  }
  0x5a   : > { %4405 = vsyncadd (%p5125_p13), [#allocation7], 4294966272  ;;  %v4214_v0 = vld [vmem:[#allocation6] sm:$0xff]   ;;  %v4215_v1 = vld [vmem:[#allocation6 + $0x8] sm:$0xff]   ;;  %s4736_s21 = scalar_lea.vmem [#allocation8], %s3182_s7  ;;  %s3521_s9 = sshll.u32 %s4424_s18, 13 }
  0x5b   : > { %3977 = vmatprep.subr.bf16.mxu0 %v4214_v0  ;;  %4121 = vmatprep.subr.bf16.mxu1 %v4214_v0  ;;  %v4216_v2 = vld [vmem:[#allocation6 + $0x10] sm:$0xff]   ;;  %v4217_v3 = vld [vmem:[#allocation6 + $0x18] sm:$0xff]   ;;  %v4222_v4 = vld [vmem:[%s4630_s8] sm:$0xff]   ;;  %s3078_s11 = sshll.u32 %s4736_s21, 4  ;;  %s5049_s18 = scalar_lea.hbm %s5108_s4, %s3521_s9  ;;  %s5051_s11 = int_to_ptr.vmem [resolvable:$true] %s3078_s11 }
  0x5c   : > { %3978 = vmatpush3.bf16.msra.mxu0 %v4214_v0  ;;  %4129 = vmatpush3.bf16.msra.mxu1 %v4214_v0  ;;  %v4223_v5 = vld [vmem:[%s4630_s8 + $0x100] sm:$0xff]   ;;  %v4219_v7 = vld [vmem:[#allocation6 + $0x28] sm:$0xff]   ;;  %v4220_v8 = vld [vmem:[#allocation6 + $0x30] sm:$0xff]   ;;  %s3065_s24 = scalar_lea.sflag [#allocation5], %s4624_s12  ;;  %s4438_s23 = smov [#allocation8]  }
  0x5d   : > { %3979 = vmatprep.subr.bf16.mxu0 %v4215_v1  ;;  %4122 = vmatprep.subr.bf16.mxu1 %v4215_v1  ;;  %v4218_v6 = vld [vmem:[#allocation6 + $0x20] sm:$0xff]   ;;  %v4221_v9 = vld [vmem:[#allocation6 + $0x38] sm:$0xff]   ;;  %v4224_v10 = vld [vmem:[%s4630_s8 + $0x8] sm:$0xff]   ;;  %s4350_s25 = sshll.u32 %s4438_s23, 4  ;;  %s4351_s25 = int_to_ptr.vmem [resolvable:$false] %s4350_s25 }
  0x5e   : > { %3993 = vmatprep.mubr.bf16.mxu0 %v4222_v4  ;;  %4057 = vmatprep.mubr.bf16.mxu1 %v4223_v5  ;;  %v4225_v11 = vld [vmem:[%s4630_s8 + $0x108] sm:$0xff]   ;;  %v4226_v12 = vld [vmem:[%s4630_s8 + $0x10] sm:$0xff]   ;;  %v4228_v14 = vld [vmem:[%s4630_s8 + $0x18] sm:$0xff]   ;;  %s4352_s27 = scalar_lea.vmem %s4351_s25, 16384  ;;  %p4353_p12 = scmp.lt.s32.totalorder %s5051_s11, %s4351_s25 }
  0x5f   : > { %v4227_v13 = vld [vmem:[%s4630_s8 + $0x110] sm:$0xff]   ;;  %v4229_v15 = vld [vmem:[%s4630_s8 + $0x118] sm:$0xff]   ;;  %v4230_v16 = vld [vmem:[%s4630_s8 + $0x20] sm:$0xff]  }
  0x60   : > { %3980 = vmatpush3.bf16.msra.mxu0 %v4215_v1  ;;  %4130 = vmatpush3.bf16.msra.mxu1 %v4215_v1  ;;  %v4231_v17 = vld [vmem:[%s4630_s8 + $0x120] sm:$0xff]   ;;  %v4232_v18 = vld [vmem:[%s4630_s8 + $0x28] sm:$0xff]   ;;  %v4234_v20 = vld [vmem:[%s4630_s8 + $0x30] sm:$0xff]  }
  0x61   : > { %3981 = vmatprep.subr.bf16.mxu0 %v4216_v2  ;;  %4123 = vmatprep.subr.bf16.mxu1 %v4216_v2  ;;  %v4233_v19 = vld [vmem:[%s4630_s8 + $0x128] sm:$0xff]   ;;  %v4235_v21 = vld [vmem:[%s4630_s8 + $0x130] sm:$0xff]   ;;  %v4236_v22 = vld [vmem:[%s4630_s8 + $0x38] sm:$0xff]  }
  0x62   : > { %v4237_v23 = vld [vmem:[%s4630_s8 + $0x138] sm:$0xff]   ;;  %v4238_v24 = vld [vmem:[%s4630_s8 + $0x40] sm:$0xff]   ;;  %v4240_v26 = vld [vmem:[%s4630_s8 + $0x48] sm:$0xff]  }
  0x63   : > { %v4239_v25 = vld [vmem:[%s4630_s8 + $0x140] sm:$0xff]   ;;  %v4241_v27 = vld [vmem:[%s4630_s8 + $0x148] sm:$0xff]   ;;  %v4242_v28 = vld [vmem:[%s4630_s8 + $0x50] sm:$0xff]  }
  0x64   : > { %3982 = vmatpush3.bf16.msra.mxu0 %v4216_v2  ;;  %4131 = vmatpush3.bf16.msra.mxu1 %v4216_v2  ;;  %v4243_v29 = vld [vmem:[%s4630_s8 + $0x150] sm:$0xff]   ;;  %v4244_v30 = vld [vmem:[%s4630_s8 + $0x58] sm:$0xff]   ;;  %v4246_v32 = vld [vmem:[%s4630_s8 + $0x60] sm:$0xff]  }
  0x65   : > { %3983 = vmatprep.subr.bf16.mxu0 %v4217_v3  ;;  %4124 = vmatprep.subr.bf16.mxu1 %v4217_v3  ;;  %v4245_v31 = vld [vmem:[%s4630_s8 + $0x158] sm:$0xff]   ;;  %v4247_v33 = vld [vmem:[%s4630_s8 + $0x160] sm:$0xff]   ;;  %v4248_v34 = vld [vmem:[%s4630_s8 + $0x68] sm:$0xff]  }
  0x66   : > { %v4249_v35 = vld [vmem:[%s4630_s8 + $0x168] sm:$0xff]   ;;  %v4250_v36 = vld [vmem:[%s4630_s8 + $0x70] sm:$0xff]   ;;  %v4252_v38 = vld [vmem:[%s4630_s8 + $0x78] sm:$0xff]  }
  0x67   : > { %v4251_v37 = vld [vmem:[%s4630_s8 + $0x170] sm:$0xff]   ;;  %v4253_v39 = vld [vmem:[%s4630_s8 + $0x178] sm:$0xff]   ;;  %v4254_v40 = vld [vmem:[%s4630_s8 + $0x80] sm:$0xff]  }
  0x68   : > { %3984 = vmatpush3.bf16.msra.mxu0 %v4217_v3  ;;  %4132 = vmatpush3.bf16.msra.mxu1 %v4217_v3  ;;  %v4255_v41 = vld [vmem:[%s4630_s8 + $0x180] sm:$0xff]   ;;  %v4256_v42 = vld [vmem:[%s4630_s8 + $0x88] sm:$0xff]   ;;  %v4258_v44 = vld [vmem:[%s4630_s8 + $0x90] sm:$0xff]  }
  0x69   : > { %3985 = vmatprep.subr.bf16.mxu0 %v4218_v6  ;;  %4125 = vmatprep.subr.bf16.mxu1 %v4218_v6  ;;  %v4257_v43 = vld [vmem:[%s4630_s8 + $0x188] sm:$0xff]   ;;  %v4259_v45 = vld [vmem:[%s4630_s8 + $0x190] sm:$0xff]   ;;  %v4260_v46 = vld [vmem:[%s4630_s8 + $0x98] sm:$0xff]  }
  0x6a   : > { %v4261_v47 = vld [vmem:[%s4630_s8 + $0x198] sm:$0xff]   ;;  %v4262_v48 = vld [vmem:[%s4630_s8 + $0xa0] sm:$0xff]   ;;  %v4264_v50 = vld [vmem:[%s4630_s8 + $0xa8] sm:$0xff]  }
  0x6b   : > { %v4263_v49 = vld [vmem:[%s4630_s8 + $0x1a0] sm:$0xff]   ;;  %v4265_v51 = vld [vmem:[%s4630_s8 + $0x1a8] sm:$0xff]   ;;  %v4266_v52 = vld [vmem:[%s4630_s8 + $0xb0] sm:$0xff]  }
  0x6c   : > { %3986 = vmatpush3.bf16.msra.mxu0 %v4218_v6  ;;  %4133 = vmatpush3.bf16.msra.mxu1 %v4218_v6  ;;  %v4267_v53 = vld [vmem:[%s4630_s8 + $0x1b0] sm:$0xff]   ;;  %v4268_v54 = vld [vmem:[%s4630_s8 + $0xb8] sm:$0xff]   ;;  %v4270_v56 = vld [vmem:[%s4630_s8 + $0xc0] sm:$0xff]  }
  0x6d   : > { %3987 = vmatprep.subr.bf16.mxu0 %v4219_v7  ;;  %4126 = vmatprep.subr.bf16.mxu1 %v4219_v7  ;;  %v4269_v55 = vld [vmem:[%s4630_s8 + $0x1b8] sm:$0xff]   ;;  %v4271_v57 = vld [vmem:[%s4630_s8 + $0x1c0] sm:$0xff]   ;;  %v4272_v58 = vld [vmem:[%s4630_s8 + $0xc8] sm:$0xff]  }
  0x6e   : > { %v4273_v59 = vld [vmem:[%s4630_s8 + $0x1c8] sm:$0xff]   ;;  %v4274_v60 = vld [vmem:[%s4630_s8 + $0xd0] sm:$0xff]   ;;  %v4276_v62 = vld [vmem:[%s4630_s8 + $0xd8] sm:$0xff]  }
  0x6f   : > { %v4275_v61 = vld [vmem:[%s4630_s8 + $0x1d0] sm:$0xff]   ;;  %v4277_v63 = vld [vmem:[%s4630_s8 + $0x1d8] sm:$0xff]   ;;  %v4278_v0 = vld [vmem:[%s4630_s8 + $0xe0] sm:$0xff]  }
  0x70   : > { %3988 = vmatpush3.bf16.msra.mxu0 %v4219_v7  ;;  %4134 = vmatpush3.bf16.msra.mxu1 %v4219_v7  ;;  %v4279_v1 = vld [vmem:[%s4630_s8 + $0x1e0] sm:$0xff]   ;;  %v4280_v2 = vld [vmem:[%s4630_s8 + $0xe8] sm:$0xff]   ;;  %v4282_v4 = vld [vmem:[%s4630_s8 + $0xf0] sm:$0xff]  }
  0x71   : > { %3989 = vmatprep.subr.bf16.mxu0 %v4220_v8  ;;  %4127 = vmatprep.subr.bf16.mxu1 %v4220_v8  ;;  %v4281_v3 = vld [vmem:[%s4630_s8 + $0x1e8] sm:$0xff]   ;;  %v4283_v5 = vld [vmem:[%s4630_s8 + $0x1f0] sm:$0xff]   ;;  %v4284_v6 = vld [vmem:[%s4630_s8 + $0xf8] sm:$0xff]  }
  0x72   : > { %v4285_v7 = vld [vmem:[%s4630_s8 + $0x1f8] sm:$0xff]   ;;  %s4346_s8 = scalar_lea.vmem %s5051_s11, 8192 }
  0x73   : > { %p4347_p4 = scmp.ne.s32.totalorder %s5051_s11, %s4346_s8  ;;  %p4354_p11 = scmp.lt.s32.totalorder %s4352_s27, %s4346_s8 }
  0x74   : > { %3990 = vmatpush3.bf16.msra.mxu0 %v4220_v8  ;;  %4135 = vmatpush3.bf16.msra.mxu1 %v4220_v8  ;;  %v4707_v8 = vld [vmem:[%s5106_s2] ss:$0 sm:$0xff] }
  0x75   : > { %3991 = vmatprep.subr.bf16.mxu0 %v4221_v9  ;;  %4128 = vmatprep.subr.bf16.mxu1 %v4221_v9  ;;  %p4348_p6 = pnand %p4347_p4, %p4565_p10  ;;  %p4355_p0 = por %p4354_p11, %p4353_p12 }
  0x77   : > { %p4349_p8 = pneg %p4348_p6 }
  0x78   : > { %3992 = vmatpush3.bf16.msra.mxu0 %v4221_v9  ;;  %4136 = vmatpush3.bf16.msra.mxu1 %v4221_v9 }
  0x79   : > { %p4356_p5 = pnand %p4355_p0, %p4349_p8 }
  0x7b   : > { %3994 = vmatmul.mubr.bf16.vlgmr.msra.gmra.mrb[0].mxu0 %v4224_v10  ;;  %4058 = vmatmul.mubr.bf16.vlgmr.msra.gmra.mrb[0].mxu1 %v4225_v11  ;;  %v4712_v10 = vld [vmem:[%s5107_s3] ss:$0 sm:$0xff] }
  0x7c   : > { %3997 = vmatprep.mubr.bf16.mxu0 %v4226_v12  ;;  %4061 = vmatprep.mubr.bf16.mxu1 %v4227_v13 }
  0x83   : > { %3998 = vmatmul.mubr.bf16.gmra.mrb[4].mxu0 %v4228_v14  ;;  %4062 = vmatmul.mubr.bf16.gmra.mrb[4].mxu1 %v4229_v15 }
  0x84   : > { %4001 = vmatprep.mubr.bf16.mxu0 %v4230_v16  ;;  %4065 = vmatprep.mubr.bf16.mxu1 %v4231_v17 }
  0x8b   : > { %4002 = vmatmul.mubr.bf16.gmra.mrb[8].mxu0 %v4232_v18  ;;  %4066 = vmatmul.mubr.bf16.gmra.mrb[8].mxu1 %v4233_v19 }
  0x8c   : > { %4005 = vmatprep.mubr.bf16.mxu0 %v4234_v20  ;;  %4069 = vmatprep.mubr.bf16.mxu1 %v4235_v21 }
  0x93   : > { %4006 = vmatmul.mubr.bf16.gmra.mrb[12].mxu0 %v4236_v22  ;;  %4070 = vmatmul.mubr.bf16.gmra.mrb[12].mxu1 %v4237_v23 }
  0x94   : > { %4009 = vmatprep.mubr.bf16.mxu0 %v4238_v24  ;;  %4073 = vmatprep.mubr.bf16.mxu1 %v4239_v25 }
  0x9b   : > { %4010 = vmatmul.mubr.bf16.gmra.mrb[16].mxu0 %v4240_v26  ;;  %4074 = vmatmul.mubr.bf16.gmra.mrb[16].mxu1 %v4241_v27 }
  0x9c   : > { %4013 = vmatprep.mubr.bf16.mxu0 %v4242_v28  ;;  %4077 = vmatprep.mubr.bf16.mxu1 %v4243_v29 }
  0xa3   : > { %4014 = vmatmul.mubr.bf16.gmra.mrb[20].mxu0 %v4244_v30  ;;  %4078 = vmatmul.mubr.bf16.gmra.mrb[20].mxu1 %v4245_v31 }
  0xa4   : > { %4017 = vmatprep.mubr.bf16.mxu0 %v4246_v32  ;;  %4081 = vmatprep.mubr.bf16.mxu1 %v4247_v33 }
  0xab   : > { %4018 = vmatmul.mubr.bf16.gmra.mrb[24].mxu0 %v4248_v34  ;;  %4082 = vmatmul.mubr.bf16.gmra.mrb[24].mxu1 %v4249_v35 }
  0xac   : > { %4021 = vmatprep.mubr.bf16.mxu0 %v4250_v36  ;;  %4085 = vmatprep.mubr.bf16.mxu1 %v4251_v37 }
  0xb3   : > { %4022 = vmatmul.mubr.bf16.gmra.mrb[28].mxu0 %v4252_v38  ;;  %4086 = vmatmul.mubr.bf16.gmra.mrb[28].mxu1 %v4253_v39 }
  0xb4   : > { %4025 = vmatprep.mubr.bf16.mxu0 %v4254_v40  ;;  %4089 = vmatprep.mubr.bf16.mxu1 %v4255_v41 }
  0xbb   : > { %4026 = vmatmul.mubr.bf16.gmra.mrb[32].mxu0 %v4256_v42  ;;  %4090 = vmatmul.mubr.bf16.gmra.mrb[32].mxu1 %v4257_v43 }
  0xbc   : > { %4029 = vmatprep.mubr.bf16.mxu0 %v4258_v44  ;;  %4093 = vmatprep.mubr.bf16.mxu1 %v4259_v45 }
  0xc3   : > { %4030 = vmatmul.mubr.bf16.gmra.mrb[36].mxu0 %v4260_v46  ;;  %4094 = vmatmul.mubr.bf16.gmra.mrb[36].mxu1 %v4261_v47 }
  0xc4   : > { %4033 = vmatprep.mubr.bf16.mxu0 %v4262_v48  ;;  %4097 = vmatprep.mubr.bf16.mxu1 %v4263_v49 }
  0xcb   : > { %4034 = vmatmul.mubr.bf16.gmra.mrb[40].mxu0 %v4264_v50  ;;  %4098 = vmatmul.mubr.bf16.gmra.mrb[40].mxu1 %v4265_v51 }
  0xcc   : > { %4037 = vmatprep.mubr.bf16.mxu0 %v4266_v52  ;;  %4101 = vmatprep.mubr.bf16.mxu1 %v4267_v53 }
  0xd3   : > { %4038 = vmatmul.mubr.bf16.gmra.mrb[44].mxu0 %v4268_v54  ;;  %4102 = vmatmul.mubr.bf16.gmra.mrb[44].mxu1 %v4269_v55 }
  0xd4   : > { %4041 = vmatprep.mubr.bf16.mxu0 %v4270_v56  ;;  %4105 = vmatprep.mubr.bf16.mxu1 %v4271_v57 }
  0xdb   : > { %4042 = vmatmul.mubr.bf16.gmra.mrb[48].mxu0 %v4272_v58  ;;  %4106 = vmatmul.mubr.bf16.gmra.mrb[48].mxu1 %v4273_v59 }
  0xdc   : > { %4045 = vmatprep.mubr.bf16.mxu0 %v4274_v60  ;;  %4109 = vmatprep.mubr.bf16.mxu1 %v4275_v61 }
  0xe3   : > { %4046 = vmatmul.mubr.bf16.gmra.mrb[52].mxu0 %v4276_v62  ;;  %4110 = vmatmul.mubr.bf16.gmra.mrb[52].mxu1 %v4277_v63 }
  0xe4   : > { %4049 = vmatprep.mubr.bf16.mxu0 %v4278_v0  ;;  %4113 = vmatprep.mubr.bf16.mxu1 %v4279_v1 }
  0xeb   : > { %4050 = vmatmul.mubr.bf16.gmra.mrb[56].mxu0 %v4280_v2  ;;  %4114 = vmatmul.mubr.bf16.gmra.mrb[56].mxu1 %v4281_v3 }
  0xec   : > { %4053 = vmatprep.mubr.bf16.mxu0 %v4282_v4  ;;  %4117 = vmatprep.mubr.bf16.mxu1 %v4283_v5 }
  0xf3   : > { %4054 = vmatmul.mubr.bf16.gmra.mrb[60].mxu0 %v4284_v6  ;;  %4118 = vmatmul.mubr.bf16.gmra.mrb[60].mxu1 %v4285_v7 }
 0x14e   : > { %v3995_v9 = vpop.f32.mrb[0].mxu0  ;;  %v4059_v11 = vpop.f32.mrb[0].mxu1 }
 0x14f   : > { %v2035_v12 = vmul.f32 %v3995_v9, %v4707_v8  ;;  %v2099_v13 = vmul.f32 %v4059_v11, %v4707_v8  ;;  %v1128_v14 = vpop.f32.mrb[1].mxu0  ;;  %v1384_v15 = vpop.f32.mrb[1].mxu1 }
 0x150   : > { %v2033_v16 = vmul.f32 %v4707_v8, %v1128_v14  ;;  %v2097_v17 = vmul.f32 %v4707_v8, %v1384_v15  ;;  %v3996_v18 = vpop.f32.mrb[2].mxu0  ;;  %v4060_v19 = vpop.f32.mrb[2].mxu1 }
 0x151   : > { %v2170_v20 = vadd.f32 %v4712_v10, %v2035_v12  ;;  %v2234_v21 = vadd.f32 %v4712_v10, %v2099_v13  ;;  %v2036_v22 = vmul.f32 %v3996_v18, %v4707_v8  ;;  %v2100_v23 = vmul.f32 %v4060_v19, %v4707_v8  ;;  %v1131_v24 = vpop.f32.mrb[3].mxu0  ;;  %v1387_v25 = vpop.f32.mrb[3].mxu1 }
 0x152   : > { %v2168_v26 = vadd.f32 %v4712_v10, %v2033_v16  ;;  %v2232_v27 = vadd.f32 %v4712_v10, %v2097_v17  ;;  %v2034_v28 = vmul.f32 %v4707_v8, %v1131_v24  ;;  %v2098_v29 = vmul.f32 %v4707_v8, %v1387_v25 }
 0x153   : > { %v2171_v30 = vadd.f32 %v4712_v10, %v2036_v22  ;;  %v2235_v31 = vadd.f32 %v4712_v10, %v2100_v23  ;;  %v2298_v34 = vmax.f32 %v2170_v20, 0.0  ;;  %v2362_v35 = vmax.f32 %v2234_v21, 0.0 }
 0x154   : > { %v2169_v32 = vadd.f32 %v4712_v10, %v2034_v28  ;;  %v2233_v33 = vadd.f32 %v4712_v10, %v2098_v29  ;;  %v2296_v38 = vmax.f32 %v2168_v26, 0.0  ;;  %v2360_v39 = vmax.f32 %v2232_v27, 0.0 }
 0x155   : > { %v2299_v36 = vmax.f32 %v2171_v30, 0.0  ;;  %v2363_v37 = vmax.f32 %v2235_v31, 0.0 }
 0x156   : > { %v2297_v40 = vmax.f32 %v2169_v32, 0.0  ;;  %v2361_v41 = vmax.f32 %v2233_v33, 0.0  ;;  %v3999_v42 = vpop.f32.mrb[4].mxu0  ;;  %v4063_v43 = vpop.f32.mrb[4].mxu1 }
 0x157   : > { %v3530_v44 = vpack.c.bf16 %v2299_v36, %v2298_v34  ;;  %v3690_v45 = vpack.c.bf16 %v2363_v37, %v2362_v35  ;;  %v2039_v46 = vmul.f32 %v3999_v42, %v4707_v8  ;;  %v2103_v47 = vmul.f32 %v4063_v43, %v4707_v8  ;;  %v1144_v48 = vpop.f32.mrb[5].mxu0  ;;  %v1400_v49 = vpop.f32.mrb[5].mxu1 }
 0x158   : > { %v3525_v50 = vpack.c.bf16 %v2297_v40, %v2296_v38  ;;  %v3685_v51 = vpack.c.bf16 %v2361_v41, %v2360_v39  ;;  %v2037_v52 = vmul.f32 %v4707_v8, %v1144_v48  ;;  %v2101_v53 = vmul.f32 %v4707_v8, %v1400_v49  ;;  %v4000_v54 = vpop.f32.mrb[6].mxu0  ;;  %v4064_v55 = vpop.f32.mrb[6].mxu1 }
 0x159   : > { %3842 = vst [vmem:[%s4736_s21 + $0x8] sm:$0xff] %v3530_v44   ;;  %3874 = vst [vmem:[%s4736_s21 + $0x108] sm:$0xff] %v3690_v45   ;;  %v2174_v56 = vadd.f32 %v4712_v10, %v2039_v46  ;;  %v2238_v57 = vadd.f32 %v4712_v10, %v2103_v47  ;;  %v2040_v58 = vmul.f32 %v4000_v54, %v4707_v8  ;;  %v1147_v60 = vpop.f32.mrb[7].mxu0  ;;  %v1403_v61 = vpop.f32.mrb[7].mxu1 }
 0x15a   : > { %v2104_v59 = vmul.f32 %v4064_v55, %v4707_v8  ;;  %3526 = vst [vmem:[%s4736_s21] sm:$0xff] %v3525_v50   ;;  %3873 = vst [vmem:[%s4736_s21 + $0x100] sm:$0xff] %v3685_v51   ;;  %v2172_v62 = vadd.f32 %v4712_v10, %v2037_v52  ;;  %v2236_v63 = vadd.f32 %v4712_v10, %v2101_v53 }
 0x15b   : > { %v2038_v0 = vmul.f32 %v4707_v8, %v1147_v60  ;;  %v2102_v1 = vmul.f32 %v4707_v8, %v1403_v61  ;;  %v2175_v2 = vadd.f32 %v4712_v10, %v2040_v58  ;;  %v2302_v6 = vmax.f32 %v2174_v56, 0.0 }
 0x15c   : > { %v2239_v3 = vadd.f32 %v4712_v10, %v2104_v59  ;;  %v2366_v7 = vmax.f32 %v2238_v57, 0.0  ;;  %v2300_v12 = vmax.f32 %v2172_v62, 0.0  ;;  %v2364_v13 = vmax.f32 %v2236_v63, 0.0 }
 0x15d   : > { %v2173_v4 = vadd.f32 %v4712_v10, %v2038_v0  ;;  %v2237_v5 = vadd.f32 %v4712_v10, %v2102_v1  ;;  %v2303_v9 = vmax.f32 %v2175_v2, 0.0 }
 0x15e   : > { %v2367_v11 = vmax.f32 %v2239_v3, 0.0  ;;  %v4003_v16 = vpop.f32.mrb[8].mxu0  ;;  %v4067_v17 = vpop.f32.mrb[8].mxu1 }
 0x15f   : > { %v2301_v14 = vmax.f32 %v2173_v4, 0.0  ;;  %v2365_v15 = vmax.f32 %v2237_v5, 0.0  ;;  %v3540_v18 = vpack.c.bf16 %v2303_v9, %v2302_v6  ;;  %v2043_v20 = vmul.f32 %v4003_v16, %v4707_v8  ;;  %v1160_v22 = vpop.f32.mrb[9].mxu0  ;;  %v1416_v23 = vpop.f32.mrb[9].mxu1 }
 0x160   : > { %v3700_v19 = vpack.c.bf16 %v2367_v11, %v2366_v7  ;;  %v2107_v21 = vmul.f32 %v4067_v17, %v4707_v8  ;;  %v2041_v26 = vmul.f32 %v4707_v8, %v1160_v22  ;;  %v2105_v27 = vmul.f32 %v4707_v8, %v1416_v23  ;;  %v4004_v28 = vpop.f32.mrb[10].mxu0  ;;  %v4068_v29 = vpop.f32.mrb[10].mxu1 }
 0x161   : > { %v3535_v24 = vpack.c.bf16 %v2301_v14, %v2300_v12  ;;  %v3695_v25 = vpack.c.bf16 %v2365_v15, %v2364_v13  ;;  %3844 = vst [vmem:[%s4736_s21 + $0x18] sm:$0xff] %v3540_v18   ;;  %v2178_v30 = vadd.f32 %v4712_v10, %v2043_v20  ;;  %v2044_v32 = vmul.f32 %v4004_v28, %v4707_v8  ;;  %v1163_v34 = vpop.f32.mrb[11].mxu0  ;;  %v1419_v35 = vpop.f32.mrb[11].mxu1 }
 0x162   : > { %3876 = vst [vmem:[%s4736_s21 + $0x118] sm:$0xff] %v3700_v19   ;;  %v2242_v31 = vadd.f32 %v4712_v10, %v2107_v21  ;;  %v2108_v33 = vmul.f32 %v4068_v29, %v4707_v8  ;;  %v2176_v36 = vadd.f32 %v4712_v10, %v2041_v26  ;;  %v2240_v37 = vadd.f32 %v4712_v10, %v2105_v27 }
 0x163   : > { %3843 = vst [vmem:[%s4736_s21 + $0x10] sm:$0xff] %v3535_v24   ;;  %3875 = vst [vmem:[%s4736_s21 + $0x110] sm:$0xff] %v3695_v25   ;;  %v2042_v38 = vmul.f32 %v4707_v8, %v1163_v34  ;;  %v2106_v39 = vmul.f32 %v4707_v8, %v1419_v35  ;;  %v2179_v40 = vadd.f32 %v4712_v10, %v2044_v32  ;;  %v2306_v44 = vmax.f32 %v2178_v30, 0.0 }
 0x164   : > { %v2243_v41 = vadd.f32 %v4712_v10, %v2108_v33  ;;  %v2370_v45 = vmax.f32 %v2242_v31, 0.0  ;;  %v2304_v48 = vmax.f32 %v2176_v36, 0.0  ;;  %v2368_v49 = vmax.f32 %v2240_v37, 0.0 }
 0x165   : > { %v2177_v42 = vadd.f32 %v4712_v10, %v2042_v38  ;;  %v2241_v43 = vadd.f32 %v4712_v10, %v2106_v39  ;;  %v2307_v46 = vmax.f32 %v2179_v40, 0.0 }
 0x166   : > { %v2371_v47 = vmax.f32 %v2243_v41, 0.0  ;;  %v4007_v52 = vpop.f32.mrb[12].mxu0  ;;  %v4071_v53 = vpop.f32.mrb[12].mxu1 }
 0x167   : > { %v2305_v50 = vmax.f32 %v2177_v42, 0.0  ;;  %v2369_v51 = vmax.f32 %v2241_v43, 0.0  ;;  %v3550_v54 = vpack.c.bf16 %v2307_v46, %v2306_v44  ;;  %v2047_v56 = vmul.f32 %v4007_v52, %v4707_v8  ;;  %v1176_v58 = vpop.f32.mrb[13].mxu0  ;;  %v1432_v59 = vpop.f32.mrb[13].mxu1 }
 0x168   : > { %v3710_v55 = vpack.c.bf16 %v2371_v47, %v2370_v45  ;;  %v2111_v57 = vmul.f32 %v4071_v53, %v4707_v8  ;;  %v2045_v62 = vmul.f32 %v4707_v8, %v1176_v58  ;;  %v2109_v63 = vmul.f32 %v4707_v8, %v1432_v59  ;;  %v4008_v0 = vpop.f32.mrb[14].mxu0  ;;  %v4072_v1 = vpop.f32.mrb[14].mxu1 }
 0x169   : > { %v3545_v60 = vpack.c.bf16 %v2305_v50, %v2304_v48  ;;  %v3705_v61 = vpack.c.bf16 %v2369_v51, %v2368_v49  ;;  %3846 = vst [vmem:[%s4736_s21 + $0x28] sm:$0xff] %v3550_v54   ;;  %v2182_v2 = vadd.f32 %v4712_v10, %v2047_v56  ;;  %v2048_v4 = vmul.f32 %v4008_v0, %v4707_v8  ;;  %v1179_v6 = vpop.f32.mrb[15].mxu0  ;;  %v1435_v7 = vpop.f32.mrb[15].mxu1 }
 0x16a   : > { %3878 = vst [vmem:[%s4736_s21 + $0x128] sm:$0xff] %v3710_v55   ;;  %v2246_v3 = vadd.f32 %v4712_v10, %v2111_v57  ;;  %v2112_v5 = vmul.f32 %v4072_v1, %v4707_v8  ;;  %v2180_v9 = vadd.f32 %v4712_v10, %v2045_v62  ;;  %v2244_v11 = vadd.f32 %v4712_v10, %v2109_v63 }
 0x16b   : > { %3845 = vst [vmem:[%s4736_s21 + $0x20] sm:$0xff] %v3545_v60   ;;  %3877 = vst [vmem:[%s4736_s21 + $0x120] sm:$0xff] %v3705_v61   ;;  %v2046_v12 = vmul.f32 %v4707_v8, %v1179_v6  ;;  %v2110_v13 = vmul.f32 %v4707_v8, %v1435_v7  ;;  %v2183_v14 = vadd.f32 %v4712_v10, %v2048_v4  ;;  %v2310_v18 = vmax.f32 %v2182_v2, 0.0 }
 0x16c   : > { %v2247_v15 = vadd.f32 %v4712_v10, %v2112_v5  ;;  %v2374_v19 = vmax.f32 %v2246_v3, 0.0  ;;  %v2308_v22 = vmax.f32 %v2180_v9, 0.0  ;;  %v2372_v23 = vmax.f32 %v2244_v11, 0.0 }
 0x16d   : > { %v2181_v16 = vadd.f32 %v4712_v10, %v2046_v12  ;;  %v2245_v17 = vadd.f32 %v4712_v10, %v2110_v13  ;;  %v2311_v20 = vmax.f32 %v2183_v14, 0.0 }
 0x16e   : > { %v2375_v21 = vmax.f32 %v2247_v15, 0.0  ;;  %v4011_v26 = vpop.f32.mrb[16].mxu0  ;;  %v4075_v27 = vpop.f32.mrb[16].mxu1 }
 0x16f   : > { %v2309_v24 = vmax.f32 %v2181_v16, 0.0  ;;  %v2373_v25 = vmax.f32 %v2245_v17, 0.0  ;;  %v3560_v28 = vpack.c.bf16 %v2311_v20, %v2310_v18  ;;  %v2051_v30 = vmul.f32 %v4011_v26, %v4707_v8  ;;  %v1192_v32 = vpop.f32.mrb[17].mxu0  ;;  %v1448_v33 = vpop.f32.mrb[17].mxu1 }
 0x170   : > { %v3720_v29 = vpack.c.bf16 %v2375_v21, %v2374_v19  ;;  %v2115_v31 = vmul.f32 %v4075_v27, %v4707_v8  ;;  %v2049_v36 = vmul.f32 %v4707_v8, %v1192_v32  ;;  %v2113_v37 = vmul.f32 %v4707_v8, %v1448_v33  ;;  %v4012_v38 = vpop.f32.mrb[18].mxu0  ;;  %v4076_v39 = vpop.f32.mrb[18].mxu1 }
 0x171   : > { %v3555_v34 = vpack.c.bf16 %v2309_v24, %v2308_v22  ;;  %v3715_v35 = vpack.c.bf16 %v2373_v25, %v2372_v23  ;;  %3848 = vst [vmem:[%s4736_s21 + $0x38] sm:$0xff] %v3560_v28   ;;  %v2186_v40 = vadd.f32 %v4712_v10, %v2051_v30  ;;  %v2052_v42 = vmul.f32 %v4012_v38, %v4707_v8  ;;  %v1195_v44 = vpop.f32.mrb[19].mxu0  ;;  %v1451_v45 = vpop.f32.mrb[19].mxu1 }
 0x172   : > { %3880 = vst [vmem:[%s4736_s21 + $0x138] sm:$0xff] %v3720_v29   ;;  %v2250_v41 = vadd.f32 %v4712_v10, %v2115_v31  ;;  %v2116_v43 = vmul.f32 %v4076_v39, %v4707_v8  ;;  %v2184_v46 = vadd.f32 %v4712_v10, %v2049_v36  ;;  %v2248_v47 = vadd.f32 %v4712_v10, %v2113_v37 }
 0x173   : > { %3847 = vst [vmem:[%s4736_s21 + $0x30] sm:$0xff] %v3555_v34   ;;  %3879 = vst [vmem:[%s4736_s21 + $0x130] sm:$0xff] %v3715_v35   ;;  %v2050_v48 = vmul.f32 %v4707_v8, %v1195_v44  ;;  %v2114_v49 = vmul.f32 %v4707_v8, %v1451_v45  ;;  %v2187_v50 = vadd.f32 %v4712_v10, %v2052_v42  ;;  %v2314_v54 = vmax.f32 %v2186_v40, 0.0 }
 0x174   : > { %v2251_v51 = vadd.f32 %v4712_v10, %v2116_v43  ;;  %v2378_v55 = vmax.f32 %v2250_v41, 0.0  ;;  %v2312_v58 = vmax.f32 %v2184_v46, 0.0  ;;  %v2376_v59 = vmax.f32 %v2248_v47, 0.0 }
 0x175   : > { %v2185_v52 = vadd.f32 %v4712_v10, %v2050_v48  ;;  %v2249_v53 = vadd.f32 %v4712_v10, %v2114_v49  ;;  %v2315_v56 = vmax.f32 %v2187_v50, 0.0 }
 0x176   : > { %v2379_v57 = vmax.f32 %v2251_v51, 0.0  ;;  %v4015_v62 = vpop.f32.mrb[20].mxu0  ;;  %v4079_v63 = vpop.f32.mrb[20].mxu1 }
 0x177   : > { %v2313_v60 = vmax.f32 %v2185_v52, 0.0  ;;  %v2377_v61 = vmax.f32 %v2249_v53, 0.0  ;;  %v3570_v0 = vpack.c.bf16 %v2315_v56, %v2314_v54  ;;  %v2055_v2 = vmul.f32 %v4015_v62, %v4707_v8  ;;  %v1208_v4 = vpop.f32.mrb[21].mxu0  ;;  %v1464_v5 = vpop.f32.mrb[21].mxu1 }
 0x178   : > { %v3730_v1 = vpack.c.bf16 %v2379_v57, %v2378_v55  ;;  %v2119_v3 = vmul.f32 %v4079_v63, %v4707_v8  ;;  %v2053_v9 = vmul.f32 %v4707_v8, %v1208_v4  ;;  %v2117_v11 = vmul.f32 %v4707_v8, %v1464_v5  ;;  %v4016_v12 = vpop.f32.mrb[22].mxu0  ;;  %v4080_v13 = vpop.f32.mrb[22].mxu1 }
 0x179   : > { %v3565_v6 = vpack.c.bf16 %v2313_v60, %v2312_v58  ;;  %v3725_v7 = vpack.c.bf16 %v2377_v61, %v2376_v59  ;;  %3850 = vst [vmem:[%s4736_s21 + $0x48] sm:$0xff] %v3570_v0   ;;  %v2190_v14 = vadd.f32 %v4712_v10, %v2055_v2  ;;  %v2056_v16 = vmul.f32 %v4016_v12, %v4707_v8  ;;  %v1211_v18 = vpop.f32.mrb[23].mxu0  ;;  %v1467_v19 = vpop.f32.mrb[23].mxu1 }
 0x17a   : > { %3882 = vst [vmem:[%s4736_s21 + $0x148] sm:$0xff] %v3730_v1   ;;  %v2254_v15 = vadd.f32 %v4712_v10, %v2119_v3  ;;  %v2120_v17 = vmul.f32 %v4080_v13, %v4707_v8  ;;  %v2188_v20 = vadd.f32 %v4712_v10, %v2053_v9  ;;  %v2252_v21 = vadd.f32 %v4712_v10, %v2117_v11 }
 0x17b   : > { %3849 = vst [vmem:[%s4736_s21 + $0x40] sm:$0xff] %v3565_v6   ;;  %3881 = vst [vmem:[%s4736_s21 + $0x140] sm:$0xff] %v3725_v7   ;;  %v2054_v22 = vmul.f32 %v4707_v8, %v1211_v18  ;;  %v2118_v23 = vmul.f32 %v4707_v8, %v1467_v19  ;;  %v2191_v24 = vadd.f32 %v4712_v10, %v2056_v16  ;;  %v2318_v28 = vmax.f32 %v2190_v14, 0.0 }
 0x17c   : > { %v2255_v25 = vadd.f32 %v4712_v10, %v2120_v17  ;;  %v2382_v29 = vmax.f32 %v2254_v15, 0.0  ;;  %v2316_v32 = vmax.f32 %v2188_v20, 0.0  ;;  %v2380_v33 = vmax.f32 %v2252_v21, 0.0 }
 0x17d   : > { %v2189_v26 = vadd.f32 %v4712_v10, %v2054_v22  ;;  %v2253_v27 = vadd.f32 %v4712_v10, %v2118_v23  ;;  %v2319_v30 = vmax.f32 %v2191_v24, 0.0 }
 0x17e   : > { %v2383_v31 = vmax.f32 %v2255_v25, 0.0  ;;  %v4019_v36 = vpop.f32.mrb[24].mxu0  ;;  %v4083_v37 = vpop.f32.mrb[24].mxu1 }
 0x17f   : > { %v2317_v34 = vmax.f32 %v2189_v26, 0.0  ;;  %v2381_v35 = vmax.f32 %v2253_v27, 0.0  ;;  %v3580_v38 = vpack.c.bf16 %v2319_v30, %v2318_v28  ;;  %v2059_v40 = vmul.f32 %v4019_v36, %v4707_v8  ;;  %v1224_v42 = vpop.f32.mrb[25].mxu0  ;;  %v1480_v43 = vpop.f32.mrb[25].mxu1 }
 0x180   : > { %v3740_v39 = vpack.c.bf16 %v2383_v31, %v2382_v29  ;;  %v2123_v41 = vmul.f32 %v4083_v37, %v4707_v8  ;;  %v2057_v46 = vmul.f32 %v4707_v8, %v1224_v42  ;;  %v2121_v47 = vmul.f32 %v4707_v8, %v1480_v43  ;;  %v4020_v48 = vpop.f32.mrb[26].mxu0  ;;  %v4084_v49 = vpop.f32.mrb[26].mxu1 }
 0x181   : > { %v3575_v44 = vpack.c.bf16 %v2317_v34, %v2316_v32  ;;  %v3735_v45 = vpack.c.bf16 %v2381_v35, %v2380_v33  ;;  %3852 = vst [vmem:[%s4736_s21 + $0x58] sm:$0xff] %v3580_v38   ;;  %v2194_v50 = vadd.f32 %v4712_v10, %v2059_v40  ;;  %v2060_v52 = vmul.f32 %v4020_v48, %v4707_v8  ;;  %v1227_v54 = vpop.f32.mrb[27].mxu0  ;;  %v1483_v55 = vpop.f32.mrb[27].mxu1 }
 0x182   : > { %3884 = vst [vmem:[%s4736_s21 + $0x158] sm:$0xff] %v3740_v39   ;;  %v2258_v51 = vadd.f32 %v4712_v10, %v2123_v41  ;;  %v2124_v53 = vmul.f32 %v4084_v49, %v4707_v8  ;;  %v2192_v56 = vadd.f32 %v4712_v10, %v2057_v46  ;;  %v2256_v57 = vadd.f32 %v4712_v10, %v2121_v47 }
 0x183   : > { %3851 = vst [vmem:[%s4736_s21 + $0x50] sm:$0xff] %v3575_v44   ;;  %3883 = vst [vmem:[%s4736_s21 + $0x150] sm:$0xff] %v3735_v45   ;;  %v2058_v58 = vmul.f32 %v4707_v8, %v1227_v54  ;;  %v2122_v59 = vmul.f32 %v4707_v8, %v1483_v55  ;;  %v2195_v60 = vadd.f32 %v4712_v10, %v2060_v52  ;;  %v2322_v0 = vmax.f32 %v2194_v50, 0.0 }
 0x184   : > { %v2259_v61 = vadd.f32 %v4712_v10, %v2124_v53  ;;  %v2386_v1 = vmax.f32 %v2258_v51, 0.0  ;;  %v2320_v4 = vmax.f32 %v2192_v56, 0.0  ;;  %v2384_v5 = vmax.f32 %v2256_v57, 0.0 }
 0x185   : > { %v2193_v62 = vadd.f32 %v4712_v10, %v2058_v58  ;;  %v2257_v63 = vadd.f32 %v4712_v10, %v2122_v59  ;;  %v2323_v2 = vmax.f32 %v2195_v60, 0.0 }
 0x186   : > { %v2387_v3 = vmax.f32 %v2259_v61, 0.0  ;;  %v4023_v9 = vpop.f32.mrb[28].mxu0  ;;  %v4087_v11 = vpop.f32.mrb[28].mxu1 }
 0x187   : > { %v2321_v6 = vmax.f32 %v2193_v62, 0.0  ;;  %v2385_v7 = vmax.f32 %v2257_v63, 0.0  ;;  %v3590_v12 = vpack.c.bf16 %v2323_v2, %v2322_v0  ;;  %v2063_v14 = vmul.f32 %v4023_v9, %v4707_v8  ;;  %v1240_v16 = vpop.f32.mrb[29].mxu0  ;;  %v1496_v17 = vpop.f32.mrb[29].mxu1 }
 0x188   : > { %v3750_v13 = vpack.c.bf16 %v2387_v3, %v2386_v1  ;;  %v2127_v15 = vmul.f32 %v4087_v11, %v4707_v8  ;;  %v2061_v20 = vmul.f32 %v4707_v8, %v1240_v16  ;;  %v2125_v21 = vmul.f32 %v4707_v8, %v1496_v17  ;;  %v4024_v22 = vpop.f32.mrb[30].mxu0  ;;  %v4088_v23 = vpop.f32.mrb[30].mxu1 }
 0x189   : > { %v3585_v18 = vpack.c.bf16 %v2321_v6, %v2320_v4  ;;  %v3745_v19 = vpack.c.bf16 %v2385_v7, %v2384_v5  ;;  %3854 = vst [vmem:[%s4736_s21 + $0x68] sm:$0xff] %v3590_v12   ;;  %v2198_v24 = vadd.f32 %v4712_v10, %v2063_v14  ;;  %v2064_v26 = vmul.f32 %v4024_v22, %v4707_v8  ;;  %v1243_v28 = vpop.f32.mrb[31].mxu0  ;;  %v1499_v29 = vpop.f32.mrb[31].mxu1 }
 0x18a   : > { %3886 = vst [vmem:[%s4736_s21 + $0x168] sm:$0xff] %v3750_v13   ;;  %v2262_v25 = vadd.f32 %v4712_v10, %v2127_v15  ;;  %v2128_v27 = vmul.f32 %v4088_v23, %v4707_v8  ;;  %v2196_v30 = vadd.f32 %v4712_v10, %v2061_v20  ;;  %v2260_v31 = vadd.f32 %v4712_v10, %v2125_v21 }
 0x18b   : > { %3853 = vst [vmem:[%s4736_s21 + $0x60] sm:$0xff] %v3585_v18   ;;  %3885 = vst [vmem:[%s4736_s21 + $0x160] sm:$0xff] %v3745_v19   ;;  %v2062_v32 = vmul.f32 %v4707_v8, %v1243_v28  ;;  %v2126_v33 = vmul.f32 %v4707_v8, %v1499_v29  ;;  %v2199_v34 = vadd.f32 %v4712_v10, %v2064_v26  ;;  %v2326_v38 = vmax.f32 %v2198_v24, 0.0 }
 0x18c   : > { %v2263_v35 = vadd.f32 %v4712_v10, %v2128_v27  ;;  %v2390_v39 = vmax.f32 %v2262_v25, 0.0  ;;  %v2324_v42 = vmax.f32 %v2196_v30, 0.0  ;;  %v2388_v43 = vmax.f32 %v2260_v31, 0.0 }
 0x18d   : > { %v2197_v36 = vadd.f32 %v4712_v10, %v2062_v32  ;;  %v2261_v37 = vadd.f32 %v4712_v10, %v2126_v33  ;;  %v2327_v40 = vmax.f32 %v2199_v34, 0.0 }
 0x18e   : > { %v2391_v41 = vmax.f32 %v2263_v35, 0.0  ;;  %v4027_v46 = vpop.f32.mrb[32].mxu0  ;;  %v4091_v47 = vpop.f32.mrb[32].mxu1 }
 0x18f   : > { %v2325_v44 = vmax.f32 %v2197_v36, 0.0  ;;  %v2389_v45 = vmax.f32 %v2261_v37, 0.0  ;;  %v3600_v48 = vpack.c.bf16 %v2327_v40, %v2326_v38  ;;  %v2067_v50 = vmul.f32 %v4027_v46, %v4707_v8  ;;  %v1256_v52 = vpop.f32.mrb[33].mxu0  ;;  %v1512_v53 = vpop.f32.mrb[33].mxu1 }
 0x190   : > { %v3760_v49 = vpack.c.bf16 %v2391_v41, %v2390_v39  ;;  %v2131_v51 = vmul.f32 %v4091_v47, %v4707_v8  ;;  %v2065_v56 = vmul.f32 %v4707_v8, %v1256_v52  ;;  %v2129_v57 = vmul.f32 %v4707_v8, %v1512_v53  ;;  %v4028_v58 = vpop.f32.mrb[34].mxu0  ;;  %v4092_v59 = vpop.f32.mrb[34].mxu1 }
 0x191   : > { %v3595_v54 = vpack.c.bf16 %v2325_v44, %v2324_v42  ;;  %v3755_v55 = vpack.c.bf16 %v2389_v45, %v2388_v43  ;;  %3856 = vst [vmem:[%s4736_s21 + $0x78] sm:$0xff] %v3600_v48   ;;  %v2202_v60 = vadd.f32 %v4712_v10, %v2067_v50  ;;  %v2068_v62 = vmul.f32 %v4028_v58, %v4707_v8  ;;  %v1259_v0 = vpop.f32.mrb[35].mxu0  ;;  %v1515_v1 = vpop.f32.mrb[35].mxu1 }
 0x192   : > { %3888 = vst [vmem:[%s4736_s21 + $0x178] sm:$0xff] %v3760_v49   ;;  %v2266_v61 = vadd.f32 %v4712_v10, %v2131_v51  ;;  %v2132_v63 = vmul.f32 %v4092_v59, %v4707_v8  ;;  %v2200_v2 = vadd.f32 %v4712_v10, %v2065_v56  ;;  %v2264_v3 = vadd.f32 %v4712_v10, %v2129_v57 }
 0x193   : > { %3855 = vst [vmem:[%s4736_s21 + $0x70] sm:$0xff] %v3595_v54   ;;  %3887 = vst [vmem:[%s4736_s21 + $0x170] sm:$0xff] %v3755_v55   ;;  %v2066_v4 = vmul.f32 %v4707_v8, %v1259_v0  ;;  %v2130_v5 = vmul.f32 %v4707_v8, %v1515_v1  ;;  %v2203_v6 = vadd.f32 %v4712_v10, %v2068_v62  ;;  %v2330_v12 = vmax.f32 %v2202_v60, 0.0 }
 0x194   : > { %v2267_v7 = vadd.f32 %v4712_v10, %v2132_v63  ;;  %v2394_v13 = vmax.f32 %v2266_v61, 0.0  ;;  %v2328_v16 = vmax.f32 %v2200_v2, 0.0  ;;  %v2392_v17 = vmax.f32 %v2264_v3, 0.0 }
 0x195   : > { %v2201_v9 = vadd.f32 %v4712_v10, %v2066_v4  ;;  %v2265_v11 = vadd.f32 %v4712_v10, %v2130_v5  ;;  %v2331_v14 = vmax.f32 %v2203_v6, 0.0 }
 0x196   : > { %v2395_v15 = vmax.f32 %v2267_v7, 0.0  ;;  %v4031_v20 = vpop.f32.mrb[36].mxu0  ;;  %v4095_v21 = vpop.f32.mrb[36].mxu1 }
 0x197   : > { %v2329_v18 = vmax.f32 %v2201_v9, 0.0  ;;  %v2393_v19 = vmax.f32 %v2265_v11, 0.0  ;;  %v3610_v22 = vpack.c.bf16 %v2331_v14, %v2330_v12  ;;  %v2071_v24 = vmul.f32 %v4031_v20, %v4707_v8  ;;  %v1272_v26 = vpop.f32.mrb[37].mxu0  ;;  %v1528_v27 = vpop.f32.mrb[37].mxu1 }
 0x198   : > { %v3770_v23 = vpack.c.bf16 %v2395_v15, %v2394_v13  ;;  %v2135_v25 = vmul.f32 %v4095_v21, %v4707_v8  ;;  %v2069_v30 = vmul.f32 %v4707_v8, %v1272_v26  ;;  %v2133_v31 = vmul.f32 %v4707_v8, %v1528_v27  ;;  %v4032_v32 = vpop.f32.mrb[38].mxu0  ;;  %v4096_v33 = vpop.f32.mrb[38].mxu1 }
 0x199   : > { %v3605_v28 = vpack.c.bf16 %v2329_v18, %v2328_v16  ;;  %v3765_v29 = vpack.c.bf16 %v2393_v19, %v2392_v17  ;;  %3858 = vst [vmem:[%s4736_s21 + $0x88] sm:$0xff] %v3610_v22   ;;  %v2206_v34 = vadd.f32 %v4712_v10, %v2071_v24  ;;  %v2072_v36 = vmul.f32 %v4032_v32, %v4707_v8  ;;  %v1275_v38 = vpop.f32.mrb[39].mxu0  ;;  %v1531_v39 = vpop.f32.mrb[39].mxu1 }
 0x19a   : > { %3890 = vst [vmem:[%s4736_s21 + $0x188] sm:$0xff] %v3770_v23   ;;  %v2270_v35 = vadd.f32 %v4712_v10, %v2135_v25  ;;  %v2136_v37 = vmul.f32 %v4096_v33, %v4707_v8  ;;  %v2204_v40 = vadd.f32 %v4712_v10, %v2069_v30  ;;  %v2268_v41 = vadd.f32 %v4712_v10, %v2133_v31 }
 0x19b   : > { %3857 = vst [vmem:[%s4736_s21 + $0x80] sm:$0xff] %v3605_v28   ;;  %3889 = vst [vmem:[%s4736_s21 + $0x180] sm:$0xff] %v3765_v29   ;;  %v2070_v42 = vmul.f32 %v4707_v8, %v1275_v38  ;;  %v2134_v43 = vmul.f32 %v4707_v8, %v1531_v39  ;;  %v2207_v44 = vadd.f32 %v4712_v10, %v2072_v36  ;;  %v2334_v48 = vmax.f32 %v2206_v34, 0.0 }
 0x19c   : > { %v2271_v45 = vadd.f32 %v4712_v10, %v2136_v37  ;;  %v2398_v49 = vmax.f32 %v2270_v35, 0.0  ;;  %v2332_v52 = vmax.f32 %v2204_v40, 0.0  ;;  %v2396_v53 = vmax.f32 %v2268_v41, 0.0 }
 0x19d   : > { %v2205_v46 = vadd.f32 %v4712_v10, %v2070_v42  ;;  %v2269_v47 = vadd.f32 %v4712_v10, %v2134_v43  ;;  %v2335_v50 = vmax.f32 %v2207_v44, 0.0 }
 0x19e   : > { %v2399_v51 = vmax.f32 %v2271_v45, 0.0  ;;  %v4035_v56 = vpop.f32.mrb[40].mxu0  ;;  %v4099_v57 = vpop.f32.mrb[40].mxu1 }
 0x19f   : > { %v2333_v54 = vmax.f32 %v2205_v46, 0.0  ;;  %v2397_v55 = vmax.f32 %v2269_v47, 0.0  ;;  %v3620_v58 = vpack.c.bf16 %v2335_v50, %v2334_v48  ;;  %v2075_v60 = vmul.f32 %v4035_v56, %v4707_v8  ;;  %v1288_v62 = vpop.f32.mrb[41].mxu0  ;;  %v1544_v63 = vpop.f32.mrb[41].mxu1 }
 0x1a0   : > { %v3780_v59 = vpack.c.bf16 %v2399_v51, %v2398_v49  ;;  %v2139_v61 = vmul.f32 %v4099_v57, %v4707_v8  ;;  %v2073_v2 = vmul.f32 %v4707_v8, %v1288_v62  ;;  %v2137_v3 = vmul.f32 %v4707_v8, %v1544_v63  ;;  %v4036_v4 = vpop.f32.mrb[42].mxu0  ;;  %v4100_v5 = vpop.f32.mrb[42].mxu1 }
 0x1a1   : > { %v3615_v0 = vpack.c.bf16 %v2333_v54, %v2332_v52  ;;  %v3775_v1 = vpack.c.bf16 %v2397_v55, %v2396_v53  ;;  %3860 = vst [vmem:[%s4736_s21 + $0x98] sm:$0xff] %v3620_v58   ;;  %v2210_v6 = vadd.f32 %v4712_v10, %v2075_v60  ;;  %v2076_v9 = vmul.f32 %v4036_v4, %v4707_v8  ;;  %v1291_v12 = vpop.f32.mrb[43].mxu0  ;;  %v1547_v13 = vpop.f32.mrb[43].mxu1 }
 0x1a2   : > { %3892 = vst [vmem:[%s4736_s21 + $0x198] sm:$0xff] %v3780_v59   ;;  %v2274_v7 = vadd.f32 %v4712_v10, %v2139_v61  ;;  %v2140_v11 = vmul.f32 %v4100_v5, %v4707_v8  ;;  %v2208_v14 = vadd.f32 %v4712_v10, %v2073_v2  ;;  %v2272_v15 = vadd.f32 %v4712_v10, %v2137_v3 }
 0x1a3   : > { %3859 = vst [vmem:[%s4736_s21 + $0x90] sm:$0xff] %v3615_v0   ;;  %3891 = vst [vmem:[%s4736_s21 + $0x190] sm:$0xff] %v3775_v1   ;;  %v2074_v16 = vmul.f32 %v4707_v8, %v1291_v12  ;;  %v2138_v17 = vmul.f32 %v4707_v8, %v1547_v13  ;;  %v2211_v18 = vadd.f32 %v4712_v10, %v2076_v9  ;;  %v2338_v22 = vmax.f32 %v2210_v6, 0.0 }
 0x1a4   : > { %v2275_v19 = vadd.f32 %v4712_v10, %v2140_v11  ;;  %v2402_v23 = vmax.f32 %v2274_v7, 0.0  ;;  %v2336_v26 = vmax.f32 %v2208_v14, 0.0  ;;  %v2400_v27 = vmax.f32 %v2272_v15, 0.0 }
 0x1a5   : > { %v2209_v20 = vadd.f32 %v4712_v10, %v2074_v16  ;;  %v2273_v21 = vadd.f32 %v4712_v10, %v2138_v17  ;;  %v2339_v24 = vmax.f32 %v2211_v18, 0.0 }
 0x1a6   : > { %v2403_v25 = vmax.f32 %v2275_v19, 0.0  ;;  %v4039_v30 = vpop.f32.mrb[44].mxu0  ;;  %v4103_v31 = vpop.f32.mrb[44].mxu1 }
 0x1a7   : > { %v2337_v28 = vmax.f32 %v2209_v20, 0.0  ;;  %v2401_v29 = vmax.f32 %v2273_v21, 0.0  ;;  %v3630_v32 = vpack.c.bf16 %v2339_v24, %v2338_v22  ;;  %v2079_v34 = vmul.f32 %v4039_v30, %v4707_v8  ;;  %v1304_v36 = vpop.f32.mrb[45].mxu0  ;;  %v1560_v37 = vpop.f32.mrb[45].mxu1 }
 0x1a8   : > { %v3790_v33 = vpack.c.bf16 %v2403_v25, %v2402_v23  ;;  %v2143_v35 = vmul.f32 %v4103_v31, %v4707_v8  ;;  %v2077_v40 = vmul.f32 %v4707_v8, %v1304_v36  ;;  %v2141_v41 = vmul.f32 %v4707_v8, %v1560_v37  ;;  %v4040_v42 = vpop.f32.mrb[46].mxu0  ;;  %v4104_v43 = vpop.f32.mrb[46].mxu1 }
 0x1a9   : > { %v3625_v38 = vpack.c.bf16 %v2337_v28, %v2336_v26  ;;  %v3785_v39 = vpack.c.bf16 %v2401_v29, %v2400_v27  ;;  %3862 = vst [vmem:[%s4736_s21 + $0xa8] sm:$0xff] %v3630_v32   ;;  %v2214_v44 = vadd.f32 %v4712_v10, %v2079_v34  ;;  %v2080_v46 = vmul.f32 %v4040_v42, %v4707_v8  ;;  %v1307_v48 = vpop.f32.mrb[47].mxu0  ;;  %v1563_v49 = vpop.f32.mrb[47].mxu1 }
 0x1aa   : > { %3894 = vst [vmem:[%s4736_s21 + $0x1a8] sm:$0xff] %v3790_v33   ;;  %v2278_v45 = vadd.f32 %v4712_v10, %v2143_v35  ;;  %v2144_v47 = vmul.f32 %v4104_v43, %v4707_v8  ;;  %v2212_v50 = vadd.f32 %v4712_v10, %v2077_v40  ;;  %v2276_v51 = vadd.f32 %v4712_v10, %v2141_v41  ;;  %v4977_v43 = vld [vmem:[%s5106_s2] ss:$0 sm:$0xff] }
 0x1ab   : > { %3861 = vst [vmem:[%s4736_s21 + $0xa0] sm:$0xff] %v3625_v38   ;;  %3893 = vst [vmem:[%s4736_s21 + $0x1a0] sm:$0xff] %v3785_v39   ;;  %v2078_v52 = vmul.f32 %v4707_v8, %v1307_v48  ;;  %v2142_v53 = vmul.f32 %v4707_v8, %v1563_v49  ;;  %v2215_v54 = vadd.f32 %v4712_v10, %v2080_v46  ;;  %v2342_v58 = vmax.f32 %v2214_v44, 0.0 }
 0x1ac   : > { %v2279_v55 = vadd.f32 %v4712_v10, %v2144_v47  ;;  %v2406_v59 = vmax.f32 %v2278_v45, 0.0  ;;  %v2340_v62 = vmax.f32 %v2212_v50, 0.0  ;;  %v2404_v63 = vmax.f32 %v2276_v51, 0.0 }
 0x1ad   : > { %v2213_v56 = vadd.f32 %v4712_v10, %v2078_v52  ;;  %v2277_v57 = vadd.f32 %v4712_v10, %v2142_v53  ;;  %v2343_v60 = vmax.f32 %v2215_v54, 0.0  ;;  %v4988_v53 = vld [vmem:[%s5107_s3] ss:$0 sm:$0xff] }
 0x1ae   : > { %v2407_v61 = vmax.f32 %v2279_v55, 0.0  ;;  %v4043_v2 = vpop.f32.mrb[48].mxu0  ;;  %v4107_v3 = vpop.f32.mrb[48].mxu1 }
 0x1af   : > { %v2341_v0 = vmax.f32 %v2213_v56, 0.0  ;;  %v2405_v1 = vmax.f32 %v2277_v57, 0.0  ;;  %v3640_v4 = vpack.c.bf16 %v2343_v60, %v2342_v58  ;;  %v2083_v6 = vmul.f32 %v4043_v2, %v4707_v8  ;;  %v1320_v9 = vpop.f32.mrb[49].mxu0  ;;  %v1576_v11 = vpop.f32.mrb[49].mxu1 }
 0x1b0   : > { %v3800_v5 = vpack.c.bf16 %v2407_v61, %v2406_v59  ;;  %v2147_v7 = vmul.f32 %v4107_v3, %v4707_v8  ;;  %v2081_v14 = vmul.f32 %v4707_v8, %v1320_v9  ;;  %v2145_v15 = vmul.f32 %v4707_v8, %v1576_v11  ;;  %v4044_v16 = vpop.f32.mrb[50].mxu0  ;;  %v4108_v17 = vpop.f32.mrb[50].mxu1 }
 0x1b1   : > { %v3635_v12 = vpack.c.bf16 %v2341_v0, %v2340_v62  ;;  %v3795_v13 = vpack.c.bf16 %v2405_v1, %v2404_v63  ;;  %3864 = vst [vmem:[%s4736_s21 + $0xb8] sm:$0xff] %v3640_v4   ;;  %v2218_v18 = vadd.f32 %v4712_v10, %v2083_v6  ;;  %v2084_v20 = vmul.f32 %v4044_v16, %v4707_v8  ;;  %v1323_v22 = vpop.f32.mrb[51].mxu0  ;;  %v1579_v23 = vpop.f32.mrb[51].mxu1 }
 0x1b2   : > { %3896 = vst [vmem:[%s4736_s21 + $0x1b8] sm:$0xff] %v3800_v5   ;;  %v2282_v19 = vadd.f32 %v4712_v10, %v2147_v7  ;;  %v2148_v21 = vmul.f32 %v4108_v17, %v4707_v8  ;;  %v2216_v24 = vadd.f32 %v4712_v10, %v2081_v14  ;;  %v2280_v25 = vadd.f32 %v4712_v10, %v2145_v15 }
 0x1b3   : > { %3863 = vst [vmem:[%s4736_s21 + $0xb0] sm:$0xff] %v3635_v12   ;;  %3895 = vst [vmem:[%s4736_s21 + $0x1b0] sm:$0xff] %v3795_v13   ;;  %v2082_v26 = vmul.f32 %v4707_v8, %v1323_v22  ;;  %v2146_v27 = vmul.f32 %v4707_v8, %v1579_v23  ;;  %v2219_v28 = vadd.f32 %v4712_v10, %v2084_v20  ;;  %v2346_v32 = vmax.f32 %v2218_v18, 0.0 }
 0x1b4   : > { %v2283_v29 = vadd.f32 %v4712_v10, %v2148_v21  ;;  %v2410_v33 = vmax.f32 %v2282_v19, 0.0  ;;  %v2344_v36 = vmax.f32 %v2216_v24, 0.0  ;;  %v2408_v37 = vmax.f32 %v2280_v25, 0.0 }
 0x1b5   : > { %v2217_v30 = vadd.f32 %v4712_v10, %v2082_v26  ;;  %v2281_v31 = vadd.f32 %v4712_v10, %v2146_v27  ;;  %v2347_v34 = vmax.f32 %v2219_v28, 0.0 }
 0x1b6   : > { %v2411_v35 = vmax.f32 %v2283_v29, 0.0  ;;  %v4047_v40 = vpop.f32.mrb[52].mxu0  ;;  %v4111_v8 = vpop.f32.mrb[52].mxu1 }
 0x1b7   : > { %v2345_v38 = vmax.f32 %v2217_v30, 0.0  ;;  %v2409_v39 = vmax.f32 %v2281_v31, 0.0  ;;  %v3650_v41 = vpack.c.bf16 %v2347_v34, %v2346_v32  ;;  %v2087_v10 = vmul.f32 %v4977_v43, %v4047_v40  ;;  %v1336_v45 = vpop.f32.mrb[53].mxu0  ;;  %v1592_v46 = vpop.f32.mrb[53].mxu1 }
 0x1b8   : > { %v3810_v42 = vpack.c.bf16 %v2411_v35, %v2410_v33  ;;  %v2151_v44 = vmul.f32 %v4977_v43, %v4111_v8  ;;  %v2085_v49 = vmul.f32 %v4977_v43, %v1336_v45  ;;  %v2149_v50 = vmul.f32 %v4977_v43, %v1592_v46  ;;  %v4048_v51 = vpop.f32.mrb[54].mxu0  ;;  %v4112_v52 = vpop.f32.mrb[54].mxu1 }
 0x1b9   : > { %v3645_v47 = vpack.c.bf16 %v2345_v38, %v2344_v36  ;;  %v3805_v48 = vpack.c.bf16 %v2409_v39, %v2408_v37  ;;  %3866 = vst [vmem:[%s4736_s21 + $0xc8] sm:$0xff] %v3650_v41   ;;  %v2222_v54 = vadd.f32 %v4988_v53, %v2087_v10  ;;  %v2088_v56 = vmul.f32 %v4977_v43, %v4048_v51  ;;  %v1339_v58 = vpop.f32.mrb[55].mxu0  ;;  %v1595_v59 = vpop.f32.mrb[55].mxu1 }
 0x1ba   : > { %3898 = vst [vmem:[%s4736_s21 + $0x1c8] sm:$0xff] %v3810_v42   ;;  %v2286_v55 = vadd.f32 %v4988_v53, %v2151_v44  ;;  %v2152_v57 = vmul.f32 %v4977_v43, %v4112_v52  ;;  %v2220_v60 = vadd.f32 %v4988_v53, %v2085_v49  ;;  %v2284_v61 = vadd.f32 %v4988_v53, %v2149_v50 }
 0x1bb   : > { %3865 = vst [vmem:[%s4736_s21 + $0xc0] sm:$0xff] %v3645_v47   ;;  %3897 = vst [vmem:[%s4736_s21 + $0x1c0] sm:$0xff] %v3805_v48   ;;  %v2086_v62 = vmul.f32 %v4977_v43, %v1339_v58  ;;  %v2150_v63 = vmul.f32 %v4977_v43, %v1595_v59  ;;  %v2223_v0 = vadd.f32 %v4988_v53, %v2088_v56  ;;  %v2350_v4 = vmax.f32 %v2222_v54, 0.0 }
 0x1bc   : > { %v2287_v1 = vadd.f32 %v4988_v53, %v2152_v57  ;;  %v2414_v5 = vmax.f32 %v2286_v55, 0.0  ;;  %v2348_v9 = vmax.f32 %v2220_v60, 0.0  ;;  %v2412_v11 = vmax.f32 %v2284_v61, 0.0 }
 0x1bd   : > { %v2221_v2 = vadd.f32 %v4988_v53, %v2086_v62  ;;  %v2285_v3 = vadd.f32 %v4988_v53, %v2150_v63  ;;  %v2351_v6 = vmax.f32 %v2223_v0, 0.0 }
 0x1be   : > { %v2415_v7 = vmax.f32 %v2287_v1, 0.0  ;;  %v4051_v14 = vpop.f32.mrb[56].mxu0  ;;  %v4115_v15 = vpop.f32.mrb[56].mxu1 }
 0x1bf   : > { %v2349_v12 = vmax.f32 %v2221_v2, 0.0  ;;  %v2413_v13 = vmax.f32 %v2285_v3, 0.0  ;;  %v3660_v16 = vpack.c.bf16 %v2351_v6, %v2350_v4  ;;  %v2091_v18 = vmul.f32 %v4977_v43, %v4051_v14  ;;  %v1352_v20 = vpop.f32.mrb[57].mxu0  ;;  %v1608_v21 = vpop.f32.mrb[57].mxu1 }
 0x1c0   : > { %v3820_v17 = vpack.c.bf16 %v2415_v7, %v2414_v5  ;;  %v2155_v19 = vmul.f32 %v4977_v43, %v4115_v15  ;;  %v2089_v24 = vmul.f32 %v4977_v43, %v1352_v20  ;;  %v2153_v25 = vmul.f32 %v4977_v43, %v1608_v21  ;;  %v4052_v26 = vpop.f32.mrb[58].mxu0  ;;  %v4116_v27 = vpop.f32.mrb[58].mxu1 }
 0x1c1   : > { %v3655_v22 = vpack.c.bf16 %v2349_v12, %v2348_v9  ;;  %v3815_v23 = vpack.c.bf16 %v2413_v13, %v2412_v11  ;;  %3868 = vst [vmem:[%s4736_s21 + $0xd8] sm:$0xff] %v3660_v16   ;;  %v2226_v28 = vadd.f32 %v4988_v53, %v2091_v18  ;;  %v2092_v30 = vmul.f32 %v4977_v43, %v4052_v26  ;;  %v1355_v32 = vpop.f32.mrb[59].mxu0  ;;  %v1611_v33 = vpop.f32.mrb[59].mxu1 }
 0x1c2   : > { %3900 = vst [vmem:[%s4736_s21 + $0x1d8] sm:$0xff] %v3820_v17   ;;  %v2290_v29 = vadd.f32 %v4988_v53, %v2155_v19  ;;  %v2156_v31 = vmul.f32 %v4977_v43, %v4116_v27  ;;  %v2224_v34 = vadd.f32 %v4988_v53, %v2089_v24  ;;  %v2288_v35 = vadd.f32 %v4988_v53, %v2153_v25 }
 0x1c3   : > { %3867 = vst [vmem:[%s4736_s21 + $0xd0] sm:$0xff] %v3655_v22   ;;  %3899 = vst [vmem:[%s4736_s21 + $0x1d0] sm:$0xff] %v3815_v23   ;;  %v2090_v36 = vmul.f32 %v4977_v43, %v1355_v32  ;;  %v2154_v37 = vmul.f32 %v4977_v43, %v1611_v33  ;;  %v2227_v38 = vadd.f32 %v4988_v53, %v2092_v30  ;;  %v2354_v41 = vmax.f32 %v2226_v28, 0.0 }
 0x1c4   : > { %v2291_v39 = vadd.f32 %v4988_v53, %v2156_v31  ;;  %v2418_v42 = vmax.f32 %v2290_v29, 0.0  ;;  %v2352_v45 = vmax.f32 %v2224_v34, 0.0  ;;  %v2416_v46 = vmax.f32 %v2288_v35, 0.0 }
 0x1c5   : > { %v2225_v40 = vadd.f32 %v4988_v53, %v2090_v36  ;;  %v2289_v8 = vadd.f32 %v4988_v53, %v2154_v37  ;;  %v2355_v10 = vmax.f32 %v2227_v38, 0.0 }
 0x1c6   : > { %v2419_v44 = vmax.f32 %v2291_v39, 0.0  ;;  %v4055_v49 = vpop.f32.mrb[60].mxu0  ;;  %v4119_v50 = vpop.f32.mrb[60].mxu1 }
 0x1c7   : > { %v2353_v47 = vmax.f32 %v2225_v40, 0.0  ;;  %v2417_v48 = vmax.f32 %v2289_v8, 0.0  ;;  %v3670_v51 = vpack.c.bf16 %v2355_v10, %v2354_v41  ;;  %v2095_v54 = vmul.f32 %v4977_v43, %v4055_v49  ;;  %v1368_v56 = vpop.f32.mrb[61].mxu0  ;;  %v1624_v57 = vpop.f32.mrb[61].mxu1 }
 0x1c8   : > { %v3830_v52 = vpack.c.bf16 %v2419_v44, %v2418_v42  ;;  %v2159_v55 = vmul.f32 %v4977_v43, %v4119_v50  ;;  %v2093_v60 = vmul.f32 %v4977_v43, %v1368_v56  ;;  %v2157_v61 = vmul.f32 %v4977_v43, %v1624_v57  ;;  %v4056_v62 = vpop.f32.mrb[62].mxu0  ;;  %v4120_v63 = vpop.f32.mrb[62].mxu1 }
 0x1c9   : > { %v3665_v58 = vpack.c.bf16 %v2353_v47, %v2352_v45  ;;  %v3825_v59 = vpack.c.bf16 %v2417_v48, %v2416_v46  ;;  %3870 = vst [vmem:[%s4736_s21 + $0xe8] sm:$0xff] %v3670_v51   ;;  %v2230_v0 = vadd.f32 %v4988_v53, %v2095_v54  ;;  %v2096_v2 = vmul.f32 %v4977_v43, %v4056_v62  ;;  %v1371_v4 = vpop.f32.mrb[63].mxu0  ;;  %v1627_v5 = vpop.f32.mrb[63].mxu1 }
 0x1ca   : > { %3902 = vst [vmem:[%s4736_s21 + $0x1e8] sm:$0xff] %v3830_v52   ;;  %v2294_v1 = vadd.f32 %v4988_v53, %v2159_v55  ;;  %v2160_v3 = vmul.f32 %v4977_v43, %v4120_v63  ;;  %v2228_v6 = vadd.f32 %v4988_v53, %v2093_v60  ;;  %v2292_v7 = vadd.f32 %v4988_v53, %v2157_v61 }
 0x1cb   : > { %3869 = vst [vmem:[%s4736_s21 + $0xe0] sm:$0xff] %v3665_v58   ;;  %3901 = vst [vmem:[%s4736_s21 + $0x1e0] sm:$0xff] %v3825_v59   ;;  %v2094_v9 = vmul.f32 %v4977_v43, %v1371_v4  ;;  %v2158_v11 = vmul.f32 %v4977_v43, %v1627_v5  ;;  %v2231_v12 = vadd.f32 %v4988_v53, %v2096_v2  ;;  %v2358_v16 = vmax.f32 %v2230_v0, 0.0 }
 0x1cc   : > { %v2295_v13 = vadd.f32 %v4988_v53, %v2160_v3  ;;  %v2422_v17 = vmax.f32 %v2294_v1, 0.0  ;;  %v2356_v43 = vmax.f32 %v2228_v6, 0.0  ;;  %v2420_v20 = vmax.f32 %v2292_v7, 0.0 }
 0x1cd   : > { %v2229_v14 = vadd.f32 %v4988_v53, %v2094_v9  ;;  %v2293_v15 = vadd.f32 %v4988_v53, %v2158_v11  ;;  %v2359_v18 = vmax.f32 %v2231_v12, 0.0 }
 0x1ce   : > { %v2423_v19 = vmax.f32 %v2295_v13, 0.0 }
 0x1cf   : > { %v2357_v21 = vmax.f32 %v2229_v14, 0.0  ;;  %v2421_v22 = vmax.f32 %v2293_v15, 0.0  ;;  %v3680_v23 = vpack.c.bf16 %v2359_v18, %v2358_v16 }
 0x1d0   : > { %v3840_v24 = vpack.c.bf16 %v2423_v19, %v2422_v17 }
 0x1d1   : > { %v3675_v53 = vpack.c.bf16 %v2357_v21, %v2356_v43  ;;  %v3835_v25 = vpack.c.bf16 %v2421_v22, %v2420_v20  ;;  %3872 = vst [vmem:[%s4736_s21 + $0xf8] sm:$0xff] %v3680_v23  }
 0x1d2   : > { %3904 = vst [vmem:[%s4736_s21 + $0x1f8] sm:$0xff] %v3840_v24  }
 0x1d3   : > { %3871 = vst [vmem:[%s4736_s21 + $0xf0] sm:$0xff] %v3675_v53   ;;  %3903 = vst [vmem:[%s4736_s21 + $0x1f0] sm:$0xff] %v3835_v25  }
 0x1d4   : > { %4359 = shalt.err (!%p4356_p5)
}
 0x1d5   : > { %s4360_s14 = scalar_lea.hbm %s5049_s18, 8192  ;;  %s4364_s28 = scalar_lea.hbm %s5108_s4, 16384 }
 0x1d6   : > { %p4361_p9 = scmp.ne.s32.totalorder %s5049_s18, %s4360_s14  ;;  %p4365_p3 = scmp.lt.u32.totalorder %s5049_s18, %s5108_s4 }
 0x1d7   : > { %p4366_p7 = scmp.lt.u32.totalorder %s4364_s28, %s4360_s14  ;;  %p4368_p4 = scmp.lt.u32.totalorder %s4360_s14, %s5049_s18 }
 0x1d8   : > { %p4362_p1 = pnand %p4361_p9, %p4565_p10 }
 0x1d9   : > { %p4367_p13 = por %p4366_p7, %p4365_p3 }
 0x1da   : > { %p4363_p2 = pneg %p4362_p1 }
 0x1db   : > { %p4369_p6 = por %p4368_p4, %p4367_p13 }
 0x1dd   : > { %p4370_p8 = pnand %p4369_p6, %p4363_p2 }
 0x1df   : > { %4373 = shalt.err (!%p4370_p8)
}
 0x1e0   : > { %s4439_s9 = smov 64   ;;  %s4440_s13 = smov 4  }
 0x1e1   : > { %4143 = dma.vmem_to_hbm [thread:$0]  (%p4565_p10), %s5051_s11, 8192, %s5049_s18, %s3065_s24, %s4439_s9, %s4439_s9, %s4440_s13  }
 0x1e2 PF: > { %s3093_s7 = sand.u32 1, %s4412_s15   ;;  %p5126_p12 = scmp.ne.s32.totalorder %s5116_s26, 0 }
 0x1e3   : > { %p5127_p11 = scmp.ge.s32.totalorder %s4432_s20, 2  ;;  %s3094_s8 = scalar_lea.sflag [#allocation5], %s3093_s7 }
 0x1e5   : > { %p4154_p0 = pnand %p5127_p11, %p5126_p12 }
 0x1e7   : > { %4407 = dma.done.wait (!%p4154_p0), %s3094_s8, 8192  }
 0x1e8   : > { %4409 = vsyncadd (!%p4154_p0), %s3094_s8, 4294959104  ;;  %s21_s20 = sadd.s32 1, %s4432_s20   ;;  %s5128_s15 = smov %s4416_s16 }
 0x1e9   : > { %p18_p5 = scmp.ge.s32.totalorder %s21_s20, 4   ;;  %s5129_s16 = smov %s4420_s17 }
 0x1ea   : > { %s5130_s17 = smov %s4574_s10  ;;  %s5131_s18 = smov %s4428_s19 }
 0x1eb   : > { %s5132_s19 = smov %s5134_s5  ;;  %20 = sbr.rel (!%p18_p5) target bundleno = 7 (0x7), region = 94 }
 0x1f2   :  { %3099 = vsyncpa [#allocation4], 1 }
 0x1f3   :  { %3101 = vsyncpa [#allocation4 + $0x1], 1 }
 0x1f4   :  { %3102 = vsyncpa [#allocation7], 1 }
 0x1f5   :  { %3103 = vsyncpa [#allocation5], 1 }
 0x1f6   :  { %3105 = vsyncpa [#allocation5 + $0x1], 1 }

</bundles_post_ra>
